<compile_context>
chip_gen: v7x
topology: tpu7x:2x2x1
jax: 0.10.0
libtpu: 0.0.40
codegen_flags: <defaults>
</compile_context>

<pallas_src>
import math

import jax
import jax.numpy as jnp
from jax.experimental import pallas as pl
from jax.experimental.pallas import tpu as pltpu

# ----------------------- model config (small, self-consistent) ---------------
DIM = 64
N_HEADS = 4
HEAD_DIM = DIM // N_HEADS        # 16
HIDDEN_DIM = 128
BATCH = 2
SEQ = 8
EPS = 1e-6


# ------------------------------- fused Pallas kernel -------------------------
def _mlp_block_kernel(x_ref, an_ref, wqkv_ref, cos_ref, sin_ref, wo_ref,
                      fn_ref, w1_ref, b1_ref, w3_ref, b3_ref, w2_ref, b2_ref,
                      o_ref):
    f32 = jnp.float32
    x = x_ref[...]                                            # (S, D) f32

    # ---- RMSNorm (attention branch), f32 ------------------------------------
    xn = x * jax.lax.rsqrt(jnp.mean(x * x, axis=-1, keepdims=True) + EPS)
    xn = xn * an_ref[...]

    # ---- one fused QKV (+ RoPE helper) projection on the MXU ---------------
    # columns: [wq*s, (wq*s)@P, wk, wk@P, wv]  (s = 1/sqrt(head_dim))
    qkv = jnp.dot(xn.astype(jnp.bfloat16), wqkv_ref[...],
                  preferred_element_type=f32)                 # (S, 5D)
    cos_t = cos_ref[...]                                      # (S, D)
    sin_t = sin_ref[...]                                      # (S, D)
    D = DIM
    q = qkv[:, 0 * D:1 * D] * cos_t + qkv[:, 1 * D:2 * D] * sin_t
    k = qkv[:, 2 * D:3 * D] * cos_t + qkv[:, 3 * D:4 * D] * sin_t
    v = qkv[:, 4 * D:5 * D]

    # ---- causal additive mask generated in-kernel ---------------------------
    row = jax.lax.broadcasted_iota(jnp.int32, (SEQ, SEQ), 0)
    col = jax.lax.broadcasted_iota(jnp.int32, (SEQ, SEQ), 1)
    neg = jnp.where(row >= col, f32(0.0), f32(-1e9))

    # ---- attention: all heads of this batch in one grid step ---------------
    head_outs = []
    for h in range(N_HEADS):                                  # static unroll
        c0 = h * HEAD_DIM
        qh = q[:, c0:c0 + HEAD_DIM].astype(jnp.bfloat16)      # (S, hd)
        kh = k[:, c0:c0 + HEAD_DIM].astype(jnp.bfloat16)
        vh = v[:, c0:c0 + HEAD_DIM].astype(jnp.bfloat16)
        # contract last dims directly (no explicit transpose of k)
        s = jax.lax.dot_general(qh, kh, (((1,), (1,)), ((), ())),
                                preferred_element_type=f32)   # (S, S)
        s = s + neg
        # manual softmax in f32, reciprocal on the EUP
        m = jnp.max(s, axis=-1, keepdims=True)
        e = jnp.exp(s - m)
        l = jnp.sum(e, axis=-1, keepdims=True)
        p = e * pl.reciprocal(l, approx=True)
        head_outs.append(jnp.dot(p.astype(jnp.bfloat16), vh,
                                 preferred_element_type=f32)) # (S, hd)
    attn = jnp.concatenate(head_outs, axis=-1)                # (S, D)

    # ---- output projection + residual ---------------------------------------
    h_res = x + jnp.dot(attn.astype(jnp.bfloat16), wo_ref[...],
                        preferred_element_type=f32)

    # ---- RMSNorm (ffn) + SwiGLU FFN + residual ------------------------------
    hn = h_res * jax.lax.rsqrt(
        jnp.mean(h_res * h_res, axis=-1, keepdims=True) + EPS)
    hn = hn * fn_ref[...]
    hn_b = hn.astype(jnp.bfloat16)
    h1 = jnp.dot(hn_b, w1_ref[...], preferred_element_type=f32) + b1_ref[...]
    h3 = jnp.dot(hn_b, w3_ref[...], preferred_element_type=f32) + b3_ref[...]
    g = (h1 * jax.lax.logistic(h1)) * h3                      # silu(h1) * h3, f32
    ff = jnp.dot(g.astype(jnp.bfloat16), w2_ref[...],
                 preferred_element_type=f32) + b2_ref[...]
    o_ref[...] = h_res + ff


# --------------------------- wrapper: weight prep + call ----------------------
def mlp_block(x, params, cos, sin):
    B, S, D = x.shape
    Hd = HIDDEN_DIM
    scale = 1.0 / math.sqrt(HEAD_DIM)

    # Signed-permutation matrix P implementing the interleaved-pair swap of
    # RoPE:  (q @ P)[2j] = -q[2j+1], (q @ P)[2j+1] = q[2j].
    ii = jnp.arange(D)[:, None]
    jj = jnp.arange(D)[None, :]
    P = (jnp.where((jj == ii + 1) & (ii % 2 == 0), 1.0, 0.0)
         - jnp.where((jj == ii - 1) & (ii % 2 == 1), 1.0, 0.0)).astype(jnp.float32)

    wq_s = params["wq"] * scale                       # fold 1/sqrt(hd) into wq
    wqkv = jnp.concatenate(
        [wq_s, wq_s @ P, params["wk"], params["wk"] @ P, params["wv"]],
        axis=1).astype(jnp.bfloat16)                  # (D, 5D), one MXU pass

    # cos/sin expanded to interleaved-pair full width and tiled across heads
    cos_t = jnp.tile(jnp.repeat(cos, 2, axis=-1), (1, N_HEADS))   # (S, D)
    sin_t = jnp.tile(jnp.repeat(sin, 2, axis=-1), (1, N_HEADS))   # (S, D)

    x2d = x.reshape(B * S, D)
    out2d = pl.pallas_call(
        _mlp_block_kernel,
        out_shape=jax.ShapeDtypeStruct((B * S, D), jnp.float32),
        grid=(B,),
        in_specs=[
            pl.BlockSpec((S, D), lambda b: (b, 0)),          # x rows of batch b
            pl.BlockSpec((1, D), lambda b: (0, 0)),          # attn norm weight
            pl.BlockSpec((D, 5 * D), lambda b: (0, 0)),      # fused QKV(+RoPE) W
            pl.BlockSpec((S, D), lambda b: (0, 0)),          # cos (tiled)
            pl.BlockSpec((S, D), lambda b: (0, 0)),          # sin (tiled)
            pl.BlockSpec((D, D), lambda b: (0, 0)),          # wo
            pl.BlockSpec((1, D), lambda b: (0, 0)),          # ffn norm weight
            pl.BlockSpec((D, Hd), lambda b: (0, 0)),         # w1
            pl.BlockSpec((1, Hd), lambda b: (0, 0)),         # b1
            pl.BlockSpec((D, Hd), lambda b: (0, 0)),         # w3
            pl.BlockSpec((1, Hd), lambda b: (0, 0)),         # b3
            pl.BlockSpec((Hd, D), lambda b: (0, 0)),         # w2
            pl.BlockSpec((1, D), lambda b: (0, 0)),          # b2
        ],
        out_specs=pl.BlockSpec((S, D), lambda b: (b, 0)),
        compiler_params=pltpu.CompilerParams(
            dimension_semantics=("parallel",)),
    )(x2d, params["attn_norm"], wqkv, cos_t, sin_t,
      params["wo"].astype(jnp.bfloat16), params["ffn_norm"],
      params["w1"].astype(jnp.bfloat16), params["b1"],
      params["w3"].astype(jnp.bfloat16), params["b3"],
      params["w2"].astype(jnp.bfloat16), params["b2"])
    return out2d.reshape(B, S, D)


# --------------------------- pure-JAX f32 reference ---------------------------
def apply_rope(xq, xk, cos, sin):
    # xq, xk: (B, S, H, hd); cos/sin: (S, hd//2), interleaved (re, im) pairs,
    # matching torch.view_as_complex semantics.
    def rot(t):
        tr = t.reshape(*t.shape[:-1], -1, 2)
        t0, t1 = tr[..., 0], tr[..., 1]
        c = cos[None, :, None, :]
        s = sin[None, :, None, :]
        o0 = t0 * c - t1 * s
        o1 = t0 * s + t1 * c
        return jnp.stack([o0, o1], axis=-1).reshape(t.shape)
    return rot(xq), rot(xk)


def reference_mlp(x, p, cos, sin, mask):
    B, S, D = x.shape
    H, hd = N_HEADS, HEAD_DIM

    def rms(t, w):
        return t * jax.lax.rsqrt(jnp.mean(t * t, -1, keepdims=True) + EPS) * w

    xn = rms(x, p["attn_norm"][0])
    q = (xn @ p["wq"]).reshape(B, S, H, hd)
    k = (xn @ p["wk"]).reshape(B, S, H, hd)
    v = (xn @ p["wv"]).reshape(B, S, H, hd)
    q, k = apply_rope(q, k, cos, sin)
    qh, kh, vh = (t.transpose(0, 2, 1, 3) for t in (q, k, v))
    s = jnp.einsum("bhqd,bhkd->bhqk", qh, kh) / math.sqrt(hd) + mask
    s = jax.nn.softmax(s, axis=-1)
    o = jnp.einsum("bhqk,bhkd->bhqd", s, vh)
    o = o.transpose(0, 2, 1, 3).reshape(B, S, D) @ p["wo"]
    h = x + o
    hn = rms(h, p["ffn_norm"][0])
    h1 = hn @ p["w1"] + p["b1"][0]
    h3 = hn @ p["w3"] + p["b3"][0]
    ff = (jax.nn.silu(h1) * h3) @ p["w2"] + p["b2"][0]
    return h + ff


# ------------------------------------ main -------------------------------------
if __name__ == "__main__":
    key = jax.random.PRNGKey(0)
    ks = jax.random.split(key, 16)

    def w(k, shape, scale=0.1):
        return jax.random.normal(k, shape, jnp.float32) * scale

    params = {
        "wq": w(ks[0], (DIM, DIM)), "wk": w(ks[1], (DIM, DIM)),
        "wv": w(ks[2], (DIM, DIM)), "wo": w(ks[3], (DIM, DIM)),
        "w1": w(ks[4], (DIM, HIDDEN_DIM)), "b1": w(ks[5], (1, HIDDEN_DIM)),
        "w2": w(ks[6], (HIDDEN_DIM, DIM)), "b2": w(ks[7], (1, DIM)),
        "w3": w(ks[8], (DIM, HIDDEN_DIM)), "b3": w(ks[9], (1, HIDDEN_DIM)),
        "attn_norm": jnp.ones((1, DIM), jnp.float32),
        "ffn_norm": jnp.ones((1, DIM), jnp.float32),
    }

    x = jax.random.normal(ks[10], (BATCH, SEQ, DIM), jnp.float32)

    # rotary frequencies (like llama precompute_freqs_cis, theta=10000)
    half = HEAD_DIM // 2
    inv_freq = 1.0 / (10000.0 ** (jnp.arange(0, half, dtype=jnp.float32) / half))
    t = jnp.arange(SEQ, dtype=jnp.float32)
    angles = jnp.outer(t, inv_freq)                    # (S, hd//2)
    cos, sin = jnp.cos(angles), jnp.sin(angles)

    # causal additive mask (reference only; the kernel builds it via iota)
    mask = jnp.where(jnp.tril(jnp.ones((SEQ, SEQ), bool)),
                     0.0, -1e9).astype(jnp.float32)

    out = mlp_block(x, params, cos, sin)
    out = jax.block_until_ready(out)

    ref = reference_mlp(x, params, cos, sin, mask)
    err = float(jnp.max(jnp.abs(out - ref)))
    assert out.shape == (BATCH, SEQ, DIM)
    assert jnp.isfinite(out).all()
    # bf16 MXU inputs + approx reciprocal vs f32 reference -> loose-ish bound
    assert err < 5e-2, f"max abs error too large: {err}"

    print("KERNEL_OK")
</pallas_src>

<mosaic_0001>
module attributes {stable_mosaic.version = 11 : i64} {
  func.func @_mlp_block_kernel(%arg0: i32, %arg1: memref<8x64xf32, #tpu.memory_space<vmem>>, %arg2: memref<1x64xf32, #tpu.memory_space<vmem>>, %arg3: memref<64x320xbf16, #tpu.memory_space<vmem>>, %arg4: memref<8x64xf32, #tpu.memory_space<vmem>>, %arg5: memref<8x64xf32, #tpu.memory_space<vmem>>, %arg6: memref<64x64xbf16, #tpu.memory_space<vmem>>, %arg7: memref<1x64xf32, #tpu.memory_space<vmem>>, %arg8: memref<64x128xbf16, #tpu.memory_space<vmem>>, %arg9: memref<1x128xf32, #tpu.memory_space<vmem>>, %arg10: memref<64x128xbf16, #tpu.memory_space<vmem>>, %arg11: memref<1x128xf32, #tpu.memory_space<vmem>>, %arg12: memref<128x64xbf16, #tpu.memory_space<vmem>>, %arg13: memref<1x64xf32, #tpu.memory_space<vmem>>, %arg14: memref<8x64xf32, #tpu.memory_space<vmem>>) attributes {dimension_semantics = [#tpu.dimension_semantics<parallel>], iteration_bounds = array<i64: 2>, scalar_prefetch = 0 : i64, scratch_operands = 0 : i64, tpu.core_type = #tpu.core_type<tc>, window_params = [{transform_indices = @transform_0, window_bounds = array<i64: 8, 64>}, {pipeline_mode = #tpu.pipeline_mode<synchronous>, transform_indices = @transform_1, window_bounds = array<i64: 1, 64>}, {pipeline_mode = #tpu.pipeline_mode<synchronous>, transform_indices = @transform_2, window_bounds = array<i64: 64, 320>}, {pipeline_mode = #tpu.pipeline_mode<synchronous>, transform_indices = @transform_3, window_bounds = array<i64: 8, 64>}, {pipeline_mode = #tpu.pipeline_mode<synchronous>, transform_indices = @transform_4, window_bounds = array<i64: 8, 64>}, {pipeline_mode = #tpu.pipeline_mode<synchronous>, transform_indices = @transform_5, window_bounds = array<i64: 64, 64>}, {pipeline_mode = #tpu.pipeline_mode<synchronous>, transform_indices = @transform_6, window_bounds = array<i64: 1, 64>}, {pipeline_mode = #tpu.pipeline_mode<synchronous>, transform_indices = @transform_7, window_bounds = array<i64: 64, 128>}, {pipeline_mode = #tpu.pipeline_mode<synchronous>, transform_indices = @transform_8, window_bounds = array<i64: 1, 128>}, {pipeline_mode = #tpu.pipeline_mode<synchronous>, transform_indices = @transform_9, window_bounds = array<i64: 64, 128>}, {pipeline_mode = #tpu.pipeline_mode<synchronous>, transform_indices = @transform_10, window_bounds = array<i64: 1, 128>}, {pipeline_mode = #tpu.pipeline_mode<synchronous>, transform_indices = @transform_11, window_bounds = array<i64: 128, 64>}, {pipeline_mode = #tpu.pipeline_mode<synchronous>, transform_indices = @transform_12, window_bounds = array<i64: 1, 64>}, {transform_indices = @transform_13, window_bounds = array<i64: 8, 64>}]} {
    %c0 = arith.constant 0 : index
    %c0_0 = arith.constant 0 : index
    %0 = vector.load %arg1[%c0, %c0_0] : memref<8x64xf32, #tpu.memory_space<vmem>>, vector<8x64xf32>
    %1 = arith.mulf %0, %0 : vector<8x64xf32>
    %cst = arith.constant dense<0.000000e+00> : vector<8xf32>
    %2 = vector.multi_reduction <add>, %1, %cst [1] : vector<8x64xf32> to vector<8xf32>
    %3 = vector.shape_cast %2 : vector<8xf32> to vector<8x1xf32>
    %cst_1 = arith.constant 6.400000e+01 : f32
    %4 = vector.broadcast %cst_1 : f32 to vector<8x1xf32>
    %5 = arith.divf %3, %4 : vector<8x1xf32>
    %cst_2 = arith.constant 9.99999997E-7 : f32
    %6 = vector.broadcast %cst_2 : f32 to vector<8x1xf32>
    %7 = arith.addf %5, %6 : vector<8x1xf32>
    %8 = math.rsqrt %7 : vector<8x1xf32>
    %9 = vector.broadcast %8 : vector<8x1xf32> to vector<8x64xf32>
    %10 = arith.mulf %0, %9 : vector<8x64xf32>
    %c0_3 = arith.constant 0 : index
    %c0_4 = arith.constant 0 : index
    %11 = vector.load %arg2[%c0_3, %c0_4] : memref<1x64xf32, #tpu.memory_space<vmem>>, vector<1x64xf32>
    %12 = vector.broadcast %11 : vector<1x64xf32> to vector<8x64xf32>
    %13 = arith.mulf %10, %12 : vector<8x64xf32>
    %14 = arith.truncf %13 : vector<8x64xf32> to vector<8x64xbf16>
    %c0_5 = arith.constant 0 : index
    %c0_6 = arith.constant 0 : index
    %15 = vector.load %arg3[%c0_5, %c0_6] : memref<64x320xbf16, #tpu.memory_space<vmem>>, vector<64x320xbf16>
    %cst_7 = arith.constant dense<0.000000e+00> : vector<8x320xf32>
    %16 = tpu.matmul %14, %15, %cst_7 {dimension_numbers = #tpu.dot_dimension_numbers<[1], [0], [0], [1], [0, 0, 1, 1], [], []>} : vector<8x64xbf16>, vector<64x320xbf16>, vector<8x320xf32> -> vector<8x320xf32>
    %c0_8 = arith.constant 0 : index
    %c0_9 = arith.constant 0 : index
    %17 = vector.load %arg4[%c0_8, %c0_9] : memref<8x64xf32, #tpu.memory_space<vmem>>, vector<8x64xf32>
    %c0_10 = arith.constant 0 : index
    %c0_11 = arith.constant 0 : index
    %18 = vector.load %arg5[%c0_10, %c0_11] : memref<8x64xf32, #tpu.memory_space<vmem>>, vector<8x64xf32>
    %19 = vector.extract_strided_slice %16 {offsets = [0, 0], sizes = [8, 64], strides = [1, 1]} : vector<8x320xf32> to vector<8x64xf32>
    %20 = arith.mulf %19, %17 : vector<8x64xf32>
    %21 = vector.extract_strided_slice %16 {offsets = [0, 64], sizes = [8, 64], strides = [1, 1]} : vector<8x320xf32> to vector<8x64xf32>
    %22 = arith.mulf %21, %18 : vector<8x64xf32>
    %23 = arith.addf %20, %22 : vector<8x64xf32>
    %24 = vector.extract_strided_slice %16 {offsets = [0, 128], sizes = [8, 64], strides = [1, 1]} : vector<8x320xf32> to vector<8x64xf32>
    %25 = arith.mulf %24, %17 : vector<8x64xf32>
    %26 = vector.extract_strided_slice %16 {offsets = [0, 192], sizes = [8, 64], strides = [1, 1]} : vector<8x320xf32> to vector<8x64xf32>
    %27 = arith.mulf %26, %18 : vector<8x64xf32>
    %28 = arith.addf %25, %27 : vector<8x64xf32>
    %29 = vector.extract_strided_slice %16 {offsets = [0, 256], sizes = [8, 64], strides = [1, 1]} : vector<8x320xf32> to vector<8x64xf32>
    %30 = tpu.iota {dimensions = array<i32: 0>} : vector<8x8xi32>
    %31 = tpu.iota {dimensions = array<i32: 1>} : vector<8x8xi32>
    %32 = arith.cmpi sge, %30, %31 : vector<8x8xi32>
    %cst_12 = arith.constant 0.000000e+00 : f32
    %cst_13 = arith.constant -1.000000e+09 : f32
    %33 = vector.broadcast %cst_12 : f32 to vector<8x8xf32>
    %34 = vector.broadcast %cst_13 : f32 to vector<8x8xf32>
    %35 = arith.select %32, %33, %34 : vector<8x8xi1>, vector<8x8xf32>
    %36 = vector.extract_strided_slice %23 {offsets = [0, 0], sizes = [8, 16], strides = [1, 1]} : vector<8x64xf32> to vector<8x16xf32>
    %37 = arith.truncf %36 : vector<8x16xf32> to vector<8x16xbf16>
    %38 = vector.extract_strided_slice %28 {offsets = [0, 0], sizes = [8, 16], strides = [1, 1]} : vector<8x64xf32> to vector<8x16xf32>
    %39 = arith.truncf %38 : vector<8x16xf32> to vector<8x16xbf16>
    %40 = vector.extract_strided_slice %29 {offsets = [0, 0], sizes = [8, 16], strides = [1, 1]} : vector<8x64xf32> to vector<8x16xf32>
    %41 = arith.truncf %40 : vector<8x16xf32> to vector<8x16xbf16>
    %cst_14 = arith.constant dense<0.000000e+00> : vector<8x8xf32>
    %42 = tpu.matmul %37, %39, %cst_14 {dimension_numbers = #tpu.dot_dimension_numbers<[1], [1], [0], [0], [0, 0, 1, 0], [], []>} : vector<8x16xbf16>, vector<8x16xbf16>, vector<8x8xf32> -> vector<8x8xf32>
    %43 = arith.addf %42, %35 : vector<8x8xf32>
    %cst_15 = arith.constant dense<0xFF800000> : vector<8xf32>
    %44 = vector.multi_reduction <maximumf>, %43, %cst_15 [1] : vector<8x8xf32> to vector<8xf32>
    %45 = vector.shape_cast %44 : vector<8xf32> to vector<8x1xf32>
    %46 = vector.broadcast %45 : vector<8x1xf32> to vector<8x8xf32>
    %47 = arith.subf %43, %46 : vector<8x8xf32>
    %48 = math.exp %47 : vector<8x8xf32>
    %cst_16 = arith.constant dense<0.000000e+00> : vector<8xf32>
    %49 = vector.multi_reduction <add>, %48, %cst_16 [1] : vector<8x8xf32> to vector<8xf32>
    %50 = vector.shape_cast %49 : vector<8xf32> to vector<8x1xf32>
    %51 = tpu.reciprocal %50 {approx = true} : vector<8x1xf32> -> vector<8x1xf32>
    %52 = vector.broadcast %51 : vector<8x1xf32> to vector<8x8xf32>
    %53 = arith.mulf %48, %52 : vector<8x8xf32>
    %54 = arith.truncf %53 : vector<8x8xf32> to vector<8x8xbf16>
    %cst_17 = arith.constant dense<0.000000e+00> : vector<8x16xf32>
    %55 = tpu.matmul %54, %41, %cst_17 {dimension_numbers = #tpu.dot_dimension_numbers<[1], [0], [0], [1], [0, 0, 1, 1], [], []>} : vector<8x8xbf16>, vector<8x16xbf16>, vector<8x16xf32> -> vector<8x16xf32>
    %56 = vector.extract_strided_slice %23 {offsets = [0, 16], sizes = [8, 16], strides = [1, 1]} : vector<8x64xf32> to vector<8x16xf32>
    %57 = arith.truncf %56 : vector<8x16xf32> to vector<8x16xbf16>
    %58 = vector.extract_strided_slice %28 {offsets = [0, 16], sizes = [8, 16], strides = [1, 1]} : vector<8x64xf32> to vector<8x16xf32>
    %59 = arith.truncf %58 : vector<8x16xf32> to vector<8x16xbf16>
    %60 = vector.extract_strided_slice %29 {offsets = [0, 16], sizes = [8, 16], strides = [1, 1]} : vector<8x64xf32> to vector<8x16xf32>
    %61 = arith.truncf %60 : vector<8x16xf32> to vector<8x16xbf16>
    %cst_18 = arith.constant dense<0.000000e+00> : vector<8x8xf32>
    %62 = tpu.matmul %57, %59, %cst_18 {dimension_numbers = #tpu.dot_dimension_numbers<[1], [1], [0], [0], [0, 0, 1, 0], [], []>} : vector<8x16xbf16>, vector<8x16xbf16>, vector<8x8xf32> -> vector<8x8xf32>
    %63 = arith.addf %62, %35 : vector<8x8xf32>
    %cst_19 = arith.constant dense<0xFF800000> : vector<8xf32>
    %64 = vector.multi_reduction <maximumf>, %63, %cst_19 [1] : vector<8x8xf32> to vector<8xf32>
    %65 = vector.shape_cast %64 : vector<8xf32> to vector<8x1xf32>
    %66 = vector.broadcast %65 : vector<8x1xf32> to vector<8x8xf32>
    %67 = arith.subf %63, %66 : vector<8x8xf32>
    %68 = math.exp %67 : vector<8x8xf32>
    %cst_20 = arith.constant dense<0.000000e+00> : vector<8xf32>
    %69 = vector.multi_reduction <add>, %68, %cst_20 [1] : vector<8x8xf32> to vector<8xf32>
    %70 = vector.shape_cast %69 : vector<8xf32> to vector<8x1xf32>
    %71 = tpu.reciprocal %70 {approx = true} : vector<8x1xf32> -> vector<8x1xf32>
    %72 = vector.broadcast %71 : vector<8x1xf32> to vector<8x8xf32>
    %73 = arith.mulf %68, %72 : vector<8x8xf32>
    %74 = arith.truncf %73 : vector<8x8xf32> to vector<8x8xbf16>
    %cst_21 = arith.constant dense<0.000000e+00> : vector<8x16xf32>
    %75 = tpu.matmul %74, %61, %cst_21 {dimension_numbers = #tpu.dot_dimension_numbers<[1], [0], [0], [1], [0, 0, 1, 1], [], []>} : vector<8x8xbf16>, vector<8x16xbf16>, vector<8x16xf32> -> vector<8x16xf32>
    %76 = vector.extract_strided_slice %23 {offsets = [0, 32], sizes = [8, 16], strides = [1, 1]} : vector<8x64xf32> to vector<8x16xf32>
    %77 = arith.truncf %76 : vector<8x16xf32> to vector<8x16xbf16>
    %78 = vector.extract_strided_slice %28 {offsets = [0, 32], sizes = [8, 16], strides = [1, 1]} : vector<8x64xf32> to vector<8x16xf32>
    %79 = arith.truncf %78 : vector<8x16xf32> to vector<8x16xbf16>
    %80 = vector.extract_strided_slice %29 {offsets = [0, 32], sizes = [8, 16], strides = [1, 1]} : vector<8x64xf32> to vector<8x16xf32>
    %81 = arith.truncf %80 : vector<8x16xf32> to vector<8x16xbf16>
    %cst_22 = arith.constant dense<0.000000e+00> : vector<8x8xf32>
    %82 = tpu.matmul %77, %79, %cst_22 {dimension_numbers = #tpu.dot_dimension_numbers<[1], [1], [0], [0], [0, 0, 1, 0], [], []>} : vector<8x16xbf16>, vector<8x16xbf16>, vector<8x8xf32> -> vector<8x8xf32>
    %83 = arith.addf %82, %35 : vector<8x8xf32>
    %cst_23 = arith.constant dense<0xFF800000> : vector<8xf32>
    %84 = vector.multi_reduction <maximumf>, %83, %cst_23 [1] : vector<8x8xf32> to vector<8xf32>
    %85 = vector.shape_cast %84 : vector<8xf32> to vector<8x1xf32>
    %86 = vector.broadcast %85 : vector<8x1xf32> to vector<8x8xf32>
    %87 = arith.subf %83, %86 : vector<8x8xf32>
    %88 = math.exp %87 : vector<8x8xf32>
    %cst_24 = arith.constant dense<0.000000e+00> : vector<8xf32>
    %89 = vector.multi_reduction <add>, %88, %cst_24 [1] : vector<8x8xf32> to vector<8xf32>
    %90 = vector.shape_cast %89 : vector<8xf32> to vector<8x1xf32>
    %91 = tpu.reciprocal %90 {approx = true} : vector<8x1xf32> -> vector<8x1xf32>
    %92 = vector.broadcast %91 : vector<8x1xf32> to vector<8x8xf32>
    %93 = arith.mulf %88, %92 : vector<8x8xf32>
    %94 = arith.truncf %93 : vector<8x8xf32> to vector<8x8xbf16>
    %cst_25 = arith.constant dense<0.000000e+00> : vector<8x16xf32>
    %95 = tpu.matmul %94, %81, %cst_25 {dimension_numbers = #tpu.dot_dimension_numbers<[1], [0], [0], [1], [0, 0, 1, 1], [], []>} : vector<8x8xbf16>, vector<8x16xbf16>, vector<8x16xf32> -> vector<8x16xf32>
    %96 = vector.extract_strided_slice %23 {offsets = [0, 48], sizes = [8, 16], strides = [1, 1]} : vector<8x64xf32> to vector<8x16xf32>
    %97 = arith.truncf %96 : vector<8x16xf32> to vector<8x16xbf16>
    %98 = vector.extract_strided_slice %28 {offsets = [0, 48], sizes = [8, 16], strides = [1, 1]} : vector<8x64xf32> to vector<8x16xf32>
    %99 = arith.truncf %98 : vector<8x16xf32> to vector<8x16xbf16>
    %100 = vector.extract_strided_slice %29 {offsets = [0, 48], sizes = [8, 16], strides = [1, 1]} : vector<8x64xf32> to vector<8x16xf32>
    %101 = arith.truncf %100 : vector<8x16xf32> to vector<8x16xbf16>
    %cst_26 = arith.constant dense<0.000000e+00> : vector<8x8xf32>
    %102 = tpu.matmul %97, %99, %cst_26 {dimension_numbers = #tpu.dot_dimension_numbers<[1], [1], [0], [0], [0, 0, 1, 0], [], []>} : vector<8x16xbf16>, vector<8x16xbf16>, vector<8x8xf32> -> vector<8x8xf32>
    %103 = arith.addf %102, %35 : vector<8x8xf32>
    %cst_27 = arith.constant dense<0xFF800000> : vector<8xf32>
    %104 = vector.multi_reduction <maximumf>, %103, %cst_27 [1] : vector<8x8xf32> to vector<8xf32>
    %105 = vector.shape_cast %104 : vector<8xf32> to vector<8x1xf32>
    %106 = vector.broadcast %105 : vector<8x1xf32> to vector<8x8xf32>
    %107 = arith.subf %103, %106 : vector<8x8xf32>
    %108 = math.exp %107 : vector<8x8xf32>
    %cst_28 = arith.constant dense<0.000000e+00> : vector<8xf32>
    %109 = vector.multi_reduction <add>, %108, %cst_28 [1] : vector<8x8xf32> to vector<8xf32>
    %110 = vector.shape_cast %109 : vector<8xf32> to vector<8x1xf32>
    %111 = tpu.reciprocal %110 {approx = true} : vector<8x1xf32> -> vector<8x1xf32>
    %112 = vector.broadcast %111 : vector<8x1xf32> to vector<8x8xf32>
    %113 = arith.mulf %108, %112 : vector<8x8xf32>
    %114 = arith.truncf %113 : vector<8x8xf32> to vector<8x8xbf16>
    %cst_29 = arith.constant dense<0.000000e+00> : vector<8x16xf32>
    %115 = tpu.matmul %114, %101, %cst_29 {dimension_numbers = #tpu.dot_dimension_numbers<[1], [0], [0], [1], [0, 0, 1, 1], [], []>} : vector<8x8xbf16>, vector<8x16xbf16>, vector<8x16xf32> -> vector<8x16xf32>
    %116 = tpu.concatenate %55, %75, %95, %115 in 1 : vector<8x16xf32>, vector<8x16xf32>, vector<8x16xf32>, vector<8x16xf32> -> vector<8x64xf32>
    %117 = arith.truncf %116 : vector<8x64xf32> to vector<8x64xbf16>
    %c0_30 = arith.constant 0 : index
    %c0_31 = arith.constant 0 : index
    %118 = vector.load %arg6[%c0_30, %c0_31] : memref<64x64xbf16, #tpu.memory_space<vmem>>, vector<64x64xbf16>
    %cst_32 = arith.constant dense<0.000000e+00> : vector<8x64xf32>
    %119 = tpu.matmul %117, %118, %cst_32 {dimension_numbers = #tpu.dot_dimension_numbers<[1], [0], [0], [1], [0, 0, 1, 1], [], []>} : vector<8x64xbf16>, vector<64x64xbf16>, vector<8x64xf32> -> vector<8x64xf32>
    %120 = arith.addf %0, %119 : vector<8x64xf32>
    %121 = arith.mulf %120, %120 : vector<8x64xf32>
    %cst_33 = arith.constant dense<0.000000e+00> : vector<8xf32>
    %122 = vector.multi_reduction <add>, %121, %cst_33 [1] : vector<8x64xf32> to vector<8xf32>
    %123 = vector.shape_cast %122 : vector<8xf32> to vector<8x1xf32>
    %cst_34 = arith.constant 6.400000e+01 : f32
    %124 = vector.broadcast %cst_34 : f32 to vector<8x1xf32>
    %125 = arith.divf %123, %124 : vector<8x1xf32>
    %cst_35 = arith.constant 9.99999997E-7 : f32
    %126 = vector.broadcast %cst_35 : f32 to vector<8x1xf32>
    %127 = arith.addf %125, %126 : vector<8x1xf32>
    %128 = math.rsqrt %127 : vector<8x1xf32>
    %129 = vector.broadcast %128 : vector<8x1xf32> to vector<8x64xf32>
    %130 = arith.mulf %120, %129 : vector<8x64xf32>
    %c0_36 = arith.constant 0 : index
    %c0_37 = arith.constant 0 : index
    %131 = vector.load %arg7[%c0_36, %c0_37] : memref<1x64xf32, #tpu.memory_space<vmem>>, vector<1x64xf32>
    %132 = vector.broadcast %131 : vector<1x64xf32> to vector<8x64xf32>
    %133 = arith.mulf %130, %132 : vector<8x64xf32>
    %134 = arith.truncf %133 : vector<8x64xf32> to vector<8x64xbf16>
    %c0_38 = arith.constant 0 : index
    %c0_39 = arith.constant 0 : index
    %135 = vector.load %arg8[%c0_38, %c0_39] : memref<64x128xbf16, #tpu.memory_space<vmem>>, vector<64x128xbf16>
    %cst_40 = arith.constant dense<0.000000e+00> : vector<8x128xf32>
    %136 = tpu.matmul %134, %135, %cst_40 {dimension_numbers = #tpu.dot_dimension_numbers<[1], [0], [0], [1], [0, 0, 1, 1], [], []>} : vector<8x64xbf16>, vector<64x128xbf16>, vector<8x128xf32> -> vector<8x128xf32>
    %c0_41 = arith.constant 0 : index
    %c0_42 = arith.constant 0 : index
    %137 = vector.load %arg9[%c0_41, %c0_42] : memref<1x128xf32, #tpu.memory_space<vmem>>, vector<1x128xf32>
    %138 = vector.broadcast %137 : vector<1x128xf32> to vector<8x128xf32>
    %139 = arith.addf %136, %138 : vector<8x128xf32>
    %c0_43 = arith.constant 0 : index
    %c0_44 = arith.constant 0 : index
    %140 = vector.load %arg10[%c0_43, %c0_44] : memref<64x128xbf16, #tpu.memory_space<vmem>>, vector<64x128xbf16>
    %cst_45 = arith.constant dense<0.000000e+00> : vector<8x128xf32>
    %141 = tpu.matmul %134, %140, %cst_45 {dimension_numbers = #tpu.dot_dimension_numbers<[1], [0], [0], [1], [0, 0, 1, 1], [], []>} : vector<8x64xbf16>, vector<64x128xbf16>, vector<8x128xf32> -> vector<8x128xf32>
    %c0_46 = arith.constant 0 : index
    %c0_47 = arith.constant 0 : index
    %142 = vector.load %arg11[%c0_46, %c0_47] : memref<1x128xf32, #tpu.memory_space<vmem>>, vector<1x128xf32>
    %143 = vector.broadcast %142 : vector<1x128xf32> to vector<8x128xf32>
    %144 = arith.addf %141, %143 : vector<8x128xf32>
    %145 = arith.negf %139 : vector<8x128xf32>
    %146 = math.exp %145 : vector<8x128xf32>
    %cst_48 = arith.constant 1.000000e+00 : f32
    %147 = vector.broadcast %cst_48 : f32 to vector<8x128xf32>
    %148 = arith.addf %147, %146 : vector<8x128xf32>
    %149 = arith.divf %147, %148 : vector<8x128xf32>
    %150 = arith.mulf %139, %149 : vector<8x128xf32>
    %151 = arith.mulf %150, %144 : vector<8x128xf32>
    %152 = arith.truncf %151 : vector<8x128xf32> to vector<8x128xbf16>
    %c0_49 = arith.constant 0 : index
    %c0_50 = arith.constant 0 : index
    %153 = vector.load %arg12[%c0_49, %c0_50] : memref<128x64xbf16, #tpu.memory_space<vmem>>, vector<128x64xbf16>
    %cst_51 = arith.constant dense<0.000000e+00> : vector<8x64xf32>
    %154 = tpu.matmul %152, %153, %cst_51 {dimension_numbers = #tpu.dot_dimension_numbers<[1], [0], [0], [1], [0, 0, 1, 1], [], []>} : vector<8x128xbf16>, vector<128x64xbf16>, vector<8x64xf32> -> vector<8x64xf32>
    %c0_52 = arith.constant 0 : index
    %c0_53 = arith.constant 0 : index
    %155 = vector.load %arg13[%c0_52, %c0_53] : memref<1x64xf32, #tpu.memory_space<vmem>>, vector<1x64xf32>
    %156 = vector.broadcast %155 : vector<1x64xf32> to vector<8x64xf32>
    %157 = arith.addf %154, %156 : vector<8x64xf32>
    %158 = arith.addf %120, %157 : vector<8x64xf32>
    %c0_54 = arith.constant 0 : index
    %c0_55 = arith.constant 0 : index
    %159 = vector.load %arg14[%c0_54, %c0_55] : memref<8x64xf32, #tpu.memory_space<vmem>>, vector<8x64xf32>
    tpu.vector_store %arg14[%c0_54, %c0_55], %158 {strides = array<i32>} : memref<8x64xf32, #tpu.memory_space<vmem>>, vector<8x64xf32>,
    return
  }
  func.func @transform_0(%arg0: i32) -> (i32, i32) {
    %c0_i32 = arith.constant 0 : i32
    %c0_i32_0 = arith.constant 0 : i32
    return %arg0, %c0_i32 : i32, i32
  }
  func.func @transform_1(%arg0: i32) -> (i32, i32) {
    %c0_i32 = arith.constant 0 : i32
    %c0_i32_0 = arith.constant 0 : i32
    %c0_i32_1 = arith.constant 0 : i32
    return %c0_i32, %c0_i32_0 : i32, i32
  }
  func.func @transform_2(%arg0: i32) -> (i32, i32) {
    %c0_i32 = arith.constant 0 : i32
    %c0_i32_0 = arith.constant 0 : i32
    %c0_i32_1 = arith.constant 0 : i32
    return %c0_i32, %c0_i32_0 : i32, i32
  }
  func.func @transform_3(%arg0: i32) -> (i32, i32) {
    %c0_i32 = arith.constant 0 : i32
    %c0_i32_0 = arith.constant 0 : i32
    %c0_i32_1 = arith.constant 0 : i32
    return %c0_i32, %c0_i32_0 : i32, i32
  }
  func.func @transform_4(%arg0: i32) -> (i32, i32) {
    %c0_i32 = arith.constant 0 : i32
    %c0_i32_0 = arith.constant 0 : i32
    %c0_i32_1 = arith.constant 0 : i32
    return %c0_i32, %c0_i32_0 : i32, i32
  }
  func.func @transform_5(%arg0: i32) -> (i32, i32) {
    %c0_i32 = arith.constant 0 : i32
    %c0_i32_0 = arith.constant 0 : i32
    %c0_i32_1 = arith.constant 0 : i32
    return %c0_i32, %c0_i32_0 : i32, i32
  }
  func.func @transform_6(%arg0: i32) -> (i32, i32) {
    %c0_i32 = arith.constant 0 : i32
    %c0_i32_0 = arith.constant 0 : i32
    %c0_i32_1 = arith.constant 0 : i32
    return %c0_i32, %c0_i32_0 : i32, i32
  }
  func.func @transform_7(%arg0: i32) -> (i32, i32) {
    %c0_i32 = arith.constant 0 : i32
    %c0_i32_0 = arith.constant 0 : i32
    %c0_i32_1 = arith.constant 0 : i32
    return %c0_i32, %c0_i32_0 : i32, i32
  }
  func.func @transform_8(%arg0: i32) -> (i32, i32) {
    %c0_i32 = arith.constant 0 : i32
    %c0_i32_0 = arith.constant 0 : i32
    %c0_i32_1 = arith.constant 0 : i32
    return %c0_i32, %c0_i32_0 : i32, i32
  }
  func.func @transform_9(%arg0: i32) -> (i32, i32) {
    %c0_i32 = arith.constant 0 : i32
    %c0_i32_0 = arith.constant 0 : i32
    %c0_i32_1 = arith.constant 0 : i32
    return %c0_i32, %c0_i32_0 : i32, i32
  }
  func.func @transform_10(%arg0: i32) -> (i32, i32) {
    %c0_i32 = arith.constant 0 : i32
    %c0_i32_0 = arith.constant 0 : i32
    %c0_i32_1 = arith.constant 0 : i32
    return %c0_i32, %c0_i32_0 : i32, i32
  }
  func.func @transform_11(%arg0: i32) -> (i32, i32) {
    %c0_i32 = arith.constant 0 : i32
    %c0_i32_0 = arith.constant 0 : i32
    %c0_i32_1 = arith.constant 0 : i32
    return %c0_i32, %c0_i32_0 : i32, i32
  }
  func.func @transform_12(%arg0: i32) -> (i32, i32) {
    %c0_i32 = arith.constant 0 : i32
    %c0_i32_0 = arith.constant 0 : i32
    %c0_i32_1 = arith.constant 0 : i32
    return %c0_i32, %c0_i32_0 : i32, i32
  }
  func.func @transform_13(%arg0: i32) -> (i32, i32) {
    %c0_i32 = arith.constant 0 : i32
    %c0_i32_0 = arith.constant 0 : i32
    return %arg0, %c0_i32 : i32, i32
  }
}

</mosaic_0001>

<bundles_post_ra>
// kernel: tpu_custom_call.1
= control target key start
LH: loop header
LB: loop body
LE: loop exit
PB: predicated region body
PF: predicated region fallthrough
CT: control target
= control target key end

     0   :  { %s3136_s0 = inlined_call_operand.hbm [shape: f32[16,64], index: 0, kind: input, shape index: {}]   ;;  %s3137_s1 = inlined_call_operand.vmem [shape: f32[1,64], index: 1, kind: input, shape index: {}]   ;;  %s3138_s2 = inlined_call_operand.vmem [shape: bf16[64,320], index: 2, kind: input, shape index: {}]   ;;  %s3139_s3 = inlined_call_operand.vmem [shape: f32[8,64], index: 3, kind: input, shape index: {}]   ;;  %s3140_s4 = inlined_call_operand.hbm [shape: f32[8,64], index: 4, kind: input, shape index: {}]   ;;  %s3141_s5 = inlined_call_operand.hbm [shape: bf16[64,64], index: 5, kind: input, shape index: {}]   ;;  %s3142_s6 = inlined_call_operand.hbm [shape: f32[1,64], index: 6, kind: input, shape index: {}]   ;;  %s3143_s7 = inlined_call_operand.hbm [shape: bf16[64,128], index: 7, kind: input, shape index: {}]   ;;  %s3144_s8 = inlined_call_operand.hbm [shape: f32[1,128], index: 8, kind: input, shape index: {}]   ;;  %s3145_s9 = inlined_call_operand.hbm [shape: bf16[64,128], index: 9, kind: input, shape index: {}]   ;;  %s3146_s10 = inlined_call_operand.hbm [shape: f32[1,128], index: 10, kind: input, shape index: {}]   ;;  %s3147_s11 = inlined_call_operand.vmem [shape: bf16[128,64], index: 11, kind: input, shape index: {}]   ;;  %s3148_s12 = inlined_call_operand.vmem [shape: f32[1,64], index: 12, kind: input, shape index: {}]   ;;  %s3149_s13 = inlined_call_operand.hbm [shape: f32[16,64], index: 13, kind: output, shape index: {}]  }
   0x1   :  { %3155 = sst [smem:[#allocation23_spill]] %s3139_s3 }
   0x2   :  { %3156 = sst [smem:[#allocation24_spill]] %s3140_s4 }
   0x3   :  { %3157 = sst [smem:[#allocation25_spill]] %s3147_s11 }
   0x4   :  { %3158 = sst [smem:[#allocation26_spill]] %s3148_s12 }
   0x5   :  { %3159 = sst [smem:[#allocation27_spill]] %s3149_s13 }
   0x6   :  { %18 = vsyncpa [#allocation3], 0 }
   0x7   :  { %20 = vsyncpa [#allocation3 + $0x1], 0 }
   0x8   :  { %21 = vsyncpa [#allocation6], 0 }
   0x9   :  { %22 = vsyncpa [#allocation9], 0 }
   0xa   :  { %23 = vsyncpa [#allocation12], 0 }
   0xb   :  { %24 = vsyncpa [#allocation15], 0 }
   0xc   :  { %25 = vsyncpa [#allocation4], 0 }
   0xd   :  { %27 = vsyncpa [#allocation4 + $0x1], 0  ;;  %s2579_s25 = smov 0   ;;  %s2581_s26 = smov 0  }
   0xe   :  { %s2583_s27 = smov 0   ;;  %s2585_s28 = smov 0  }
   0xf LB: > { %s2487_s29 = smov [#allocation5]   ;;  %s2600_s14 = sadd.s32 4294967295, %s2485_s28   ;;  %s2485_s28 = sphi %s2585_s28, %s3188_s28   ;;  %s2481_s27 = sphi %s2583_s27, %s3187_s27   ;;  %s2477_s26 = sphi %s2581_s26, %s3186_s26   ;;  %s2473_s25 = sphi %s2579_s25, %s3185_s25  }
  0x10   : > { %s364_s30 = sshll.u32 %s2487_s29, 4  ;;  %p1750_p0 = scmp.ge.s32.totalorder %s2485_s28, 1  ;;  %s2605_s30 = int_to_ptr.vmem [resolvable:$true] %s364_s30 }
  0x11   : > { %p3152_p1 = scmp.eq.s32.totalorder %s2600_s14, 0  ;;  %p342_p2 = scmp.lt.s32.totalorder %s2485_s28, 3 }
  0x12   : > { %s2488_s16 = smov [#allocation8]   ;;  %s2489_s18 = smov [#allocation11]  }
  0x13   : > { %p2607_p3 = pnand %p1750_p0, %p342_p2  ;;  %s388_s17 = sshll.u32 %s2488_s16, 4  ;;  %s2614_s17 = int_to_ptr.vmem [resolvable:$true] %s388_s17 }
  0x14   : > { %s412_s19 = sshll.u32 %s2489_s18, 4  ;;  %s2490_s21 = smov [#allocation7]   ;;  %s2622_s19 = int_to_ptr.vmem [resolvable:$true] %s412_s19 }
  0x15   : > { %s3160_s15 = scalar_select %p2607_p3, 1, 0 }
  0x16   : > { %p2019_p5 = pneg %p2607_p3  ;;  %s2624_s22 = sshll.u32 %s2490_s21, 4  ;;  %s375_s22 = int_to_ptr.vmem [resolvable:$true] %s2624_s22 }
  0x17   : > { %s3162_s4 = sld [smem:[#allocation24_spill]] }
  0x18   : > { %p2618_p6 = pnand %p2019_p5, %p3152_p1 }
  0x1a   : > { %p2634_p8 = pneg %p2618_p6 }
  0x1d   : > { %s2177_s29 = scalar_lea.hbm %s3162_s4, 128 }
  0x1e   : > { %p2178_p7 = scmp.ne.s32.totalorder %s3162_s4, %s2177_s29  ;;  %p2184_p11 = scmp.lt.u32.totalorder %s2177_s29, %s3162_s4 }
  0x20   : > { %p2180_p9 = pnand %p2634_p8, %p2178_p7 }
  0x22   : > { %p2181_p10 = pneg %p2180_p9 }
  0x24   : > { %p2186_p12 = pnand %p2184_p11, %p2181_p10 }
  0x26   : > { %2189 = shalt.err (!%p2186_p12)
}
  0x27   : > { %s2190_s13 = scalar_lea.vmem %s2605_s30, 128  ;;  %p2198_p5 = scmp.lt.s32.totalorder %s2605_s30, %s2605_s30 }
  0x28   : > { %p2191_p13 = scmp.ne.s32.totalorder %s2605_s30, %s2190_s13  ;;  %p2199_p4 = scmp.lt.s32.totalorder %s2190_s13, %s2190_s13 }
  0x2a   : > { %p2193_p0 = pnand %p2191_p13, %p2634_p8  ;;  %p2200_p7 = por %p2199_p4, %p2198_p5 }
  0x2c   : > { %p2194_p2 = pneg %p2193_p0 }
  0x2e   : > { %p2201_p9 = pnand %p2200_p7, %p2194_p2 }
  0x30   : > { %2204 = shalt.err (!%p2201_p9)
}
  0x31   : > { %2022 = dma.hbm_to_vmem [thread:$0]  (!%p2618_p6), %s3162_s4, 128, %s2605_s30, [#allocation6]  }
  0x32   : > { %s2205_s16 = scalar_lea.hbm %s3142_s6, 16 }
  0x33   : > { %p2206_p10 = scmp.ne.s32.totalorder %s3142_s6, %s2205_s16  ;;  %p2212_p12 = scmp.lt.u32.totalorder %s2205_s16, %s3142_s6 }
  0x35   : > { %p2208_p4 = pnand %p2206_p10, %p2634_p8 }
  0x37   : > { %p2209_p11 = pneg %p2208_p4 }
  0x39   : > { %p2214_p13 = pnand %p2212_p12, %p2209_p11 }
  0x3b   : > { %2217 = shalt.err (!%p2214_p13)
}
  0x3c   : > { %s2218_s30 = scalar_lea.vmem %s2614_s17, 16  ;;  %s2225_s11 = scalar_lea.vmem %s2614_s17, 32 }
  0x3d   : > { %p2219_p0 = scmp.ne.s32.totalorder %s2614_s17, %s2218_s30  ;;  %p2226_p7 = scmp.lt.s32.totalorder %s2614_s17, %s2614_s17 }
  0x3e   : > { %p2227_p9 = scmp.lt.s32.totalorder %s2225_s11, %s2218_s30 }
  0x3f   : > { %p2221_p2 = pnand %p2219_p0, %p2634_p8 }
  0x40   : > { %p2228_p10 = por %p2227_p9, %p2226_p7 }
  0x41   : > { %p2222_p5 = pneg %p2221_p2 }
  0x43   : > { %p2229_p4 = pnand %p2228_p10, %p2222_p5 }
  0x45   : > { %2232 = shalt.err (!%p2229_p4)
}
  0x46   : > { %2028 = dma.hbm_to_vmem [thread:$0]  (!%p2618_p6), %s3142_s6, 16, %s2614_s17, [#allocation9]  }
  0x47   : > { %s2233_s29 = scalar_lea.hbm %s3144_s8, 16 }
  0x48   : > { %p2234_p11 = scmp.ne.s32.totalorder %s3144_s8, %s2233_s29  ;;  %p2240_p0 = scmp.lt.u32.totalorder %s2233_s29, %s3144_s8 }
  0x4a   : > { %p2236_p12 = pnand %p2234_p11, %p2634_p8 }
  0x4c   : > { %p2237_p13 = pneg %p2236_p12 }
  0x4e   : > { %p2242_p2 = pnand %p2240_p0, %p2237_p13 }
  0x50   : > { %2245 = shalt.err (!%p2242_p2)
}
  0x51   : > { %s2246_s17 = scalar_lea.vmem %s2622_s19, 16  ;;  %s2253_s11 = scalar_lea.vmem %s2622_s19, 32 }
  0x52   : > { %p2247_p5 = scmp.ne.s32.totalorder %s2622_s19, %s2246_s17  ;;  %p2254_p10 = scmp.lt.s32.totalorder %s2622_s19, %s2622_s19 }
  0x53   : > { %p2255_p4 = scmp.lt.s32.totalorder %s2253_s11, %s2246_s17 }
  0x54   : > { %p2249_p7 = pnand %p2247_p5, %p2634_p8 }
  0x55   : > { %p2256_p11 = por %p2255_p4, %p2254_p10 }
  0x56   : > { %p2250_p9 = pneg %p2249_p7 }
  0x58   : > { %p2257_p12 = pnand %p2256_p11, %p2250_p9 }
  0x5a   : > { %2260 = shalt.err (!%p2257_p12)
}
  0x5b   : > { %2034 = dma.hbm_to_vmem [thread:$0]  (!%p2618_p6), %s3144_s8, 16, %s2622_s19, [#allocation12]  }
  0x5c   : > { %s2261_s29 = scalar_lea.hbm %s3141_s5, 512 }
  0x5d   : > { %p2262_p13 = scmp.ne.s32.totalorder %s3141_s5, %s2261_s29  ;;  %p2268_p5 = scmp.lt.u32.totalorder %s2261_s29, %s3141_s5 }
  0x5f   : > { %p2264_p0 = pnand %p2262_p13, %p2634_p8 }
  0x61   : > { %p2265_p2 = pneg %p2264_p0 }
  0x63   : > { %p2270_p7 = pnand %p2268_p5, %p2265_p2 }
  0x65   : > { %2273 = shalt.err (!%p2270_p7)
}
  0x66   : > { %s2274_s17 = scalar_lea.vmem %s375_s22, 512  ;;  %p2282_p11 = scmp.lt.s32.totalorder %s375_s22, %s375_s22 }
  0x67   : > { %p2275_p9 = scmp.ne.s32.totalorder %s375_s22, %s2274_s17  ;;  %p2283_p12 = scmp.lt.s32.totalorder %s2274_s17, %s2274_s17 }
  0x69   : > { %p2277_p10 = pnand %p2275_p9, %p2634_p8  ;;  %p2284_p1 = por %p2283_p12, %p2282_p11 }
  0x6b   : > { %p2278_p4 = pneg %p2277_p10 }
  0x6d   : > { %p2285_p3 = pnand %p2284_p1, %p2278_p4 }
  0x6f   : > { %2288 = shalt.err (!%p2285_p3)
}
  0x70   : > { %s2491_s19 = smov 64   ;;  %s2492_s11 = smov 4  }
  0x71   : > { %2025 = dma.hbm_to_vmem [thread:$0]  (!%p2618_p6), %s3141_s5, 512, %s375_s22, [#allocation6], %s2491_s19, %s2491_s19, %s2492_s11  }
  0x72   : > { %s2493_s23 = smov [#allocation10]   ;;  %s2494_s29 = smov [#allocation13]  }
  0x73   : > { %s398_s24 = sshll.u32 %s2493_s23, 4  ;;  %s422_s16 = sshll.u32 %s2494_s29, 4  ;;  %s399_s24 = int_to_ptr.vmem [resolvable:$true] %s398_s24  ;;  %s2725_s16 = int_to_ptr.vmem [resolvable:$true] %s422_s16 }
  0x74   : > { %s2289_s30 = scalar_lea.hbm %s3143_s7, 512 }
  0x75   : > { %p2290_p1 = scmp.ne.s32.totalorder %s3143_s7, %s2289_s30  ;;  %p2296_p0 = scmp.lt.u32.totalorder %s2289_s30, %s3143_s7 }
  0x77   : > { %p2292_p3 = pnand %p2290_p1, %p2634_p8 }
  0x79   : > { %p2293_p13 = pneg %p2292_p3 }
  0x7b   : > { %p2298_p2 = pnand %p2296_p0, %p2293_p13 }
  0x7d   : > { %2301 = shalt.err (!%p2298_p2)
}
  0x7e   : > { %s2302_s12 = scalar_lea.vmem %s399_s24, 512  ;;  %p2310_p10 = scmp.lt.s32.totalorder %s399_s24, %s399_s24 }
  0x7f   : > { %p2303_p5 = scmp.ne.s32.totalorder %s399_s24, %s2302_s12  ;;  %p2311_p4 = scmp.lt.s32.totalorder %s2302_s12, %s2302_s12 }
  0x81   : > { %p2305_p7 = pnand %p2303_p5, %p2634_p8  ;;  %p2312_p11 = por %p2311_p4, %p2310_p10 }
  0x83   : > { %p2306_p9 = pneg %p2305_p7 }
  0x85   : > { %p2313_p12 = pnand %p2312_p11, %p2306_p9 }
  0x87   : > { %2316 = shalt.err (!%p2313_p12)
}
  0x88   : > { %2031 = dma.hbm_to_vmem [thread:$0]  (!%p2618_p6), %s3143_s7, 512, %s399_s24, [#allocation9], %s2491_s19, %s2491_s19, %s2492_s11  }
  0x89   : > { %s2317_s13 = scalar_lea.hbm %s3145_s9, 512 }
  0x8a   : > { %p2318_p1 = scmp.ne.s32.totalorder %s3145_s9, %s2317_s13  ;;  %p2324_p0 = scmp.lt.u32.totalorder %s2317_s13, %s3145_s9 }
  0x8c   : > { %p2320_p3 = pnand %p2318_p1, %p2634_p8 }
  0x8e   : > { %p2321_p13 = pneg %p2320_p3 }
  0x90   : > { %p2326_p2 = pnand %p2324_p0, %p2321_p13 }
  0x92   : > { %2329 = shalt.err (!%p2326_p2)
}
  0x93   : > { %s2330_s24 = scalar_lea.vmem %s2725_s16, 512  ;;  %p2338_p10 = scmp.lt.s32.totalorder %s2725_s16, %s2725_s16 }
  0x94   : > { %p2331_p5 = scmp.ne.s32.totalorder %s2725_s16, %s2330_s24  ;;  %p2339_p4 = scmp.lt.s32.totalorder %s2330_s24, %s2330_s24 }
  0x96   : > { %p2333_p7 = pnand %p2331_p5, %p2634_p8  ;;  %p2340_p11 = por %p2339_p4, %p2338_p10 }
  0x98   : > { %p2334_p9 = pneg %p2333_p7 }
  0x9a   : > { %p2341_p12 = pnand %p2340_p11, %p2334_p9 }
  0x9c   : > { %2344 = shalt.err (!%p2341_p12)
}
  0x9d   : > { %2037 = dma.hbm_to_vmem [thread:$0]  (!%p2618_p6), %s3145_s9, 512, %s2725_s16, [#allocation12], %s2491_s19, %s2491_s19, %s2492_s11  }
  0x9e   : > { %s2495_s23 = smov [#allocation14]   ;;  %s2345_s30 = scalar_lea.hbm %s3146_s10, 16 }
  0x9f   : > { %s436_s29 = sshll.u32 %s2495_s23, 4  ;;  %p2346_p1 = scmp.ne.s32.totalorder %s3146_s10, %s2345_s30  ;;  %s437_s29 = int_to_ptr.vmem [resolvable:$true] %s436_s29 }
  0xa0   : > { %p2352_p0 = scmp.lt.u32.totalorder %s2345_s30, %s3146_s10 }
  0xa1   : > { %p2348_p3 = pnand %p2346_p1, %p2634_p8 }
  0xa3   : > { %p2349_p13 = pneg %p2348_p3 }
  0xa5   : > { %p2354_p2 = pnand %p2352_p0, %p2349_p13 }
  0xa7   : > { %2357 = shalt.err (!%p2354_p2)
}
  0xa8   : > { %s2358_s19 = scalar_lea.vmem %s437_s29, 16  ;;  %s2365_s11 = scalar_lea.vmem %s437_s29, 32 }
  0xa9   : > { %p2359_p5 = scmp.ne.s32.totalorder %s437_s29, %s2358_s19  ;;  %p2366_p10 = scmp.lt.s32.totalorder %s437_s29, %s437_s29 }
  0xaa   : > { %p2367_p4 = scmp.lt.s32.totalorder %s2365_s11, %s2358_s19 }
  0xab   : > { %p2361_p7 = pnand %p2359_p5, %p2634_p8 }
  0xac   : > { %p2368_p11 = por %p2367_p4, %p2366_p10 }
  0xad   : > { %p2362_p9 = pneg %p2361_p7 }
  0xaf   : > { %p2369_p12 = pnand %p2368_p11, %p2362_p9 }
  0xb1   : > { %2372 = shalt.err (!%p2369_p12)
}
  0xb2   : > { %2040 = dma.hbm_to_vmem [thread:$0]  (!%p2618_p6), %s3146_s10, 16, %s437_s29, [#allocation15]  }
  0xb3   : > { %s1749_s18 = sadd.s32 4294967294, %s2485_s28   ;;  %s2794_s20 = sadd.s32 1, %s2485_s28  }
  0xb4   : > { %s40_s4 = sadd.s32 1, %s2481_s27  ;;  %s37_s23 = ssub.s32 %s2485_s28, %s2794_s20 }
  0xb5   : > { %p47_p8 = scmp.ne.s32.totalorder %s2481_s27, %s2477_s26  ;;  %p38_p1 = scmp.eq.s32.totalorder %s37_s23, 0 }
  0xb6   : > { %p48_p3 = scmp.eq.s32.totalorder %s2485_s28, 0  ;;  %p53_p13 = scmp.ne.s32.totalorder %s2477_s26, %s2473_s25 }
  0xb7   : > { %p329_p0 = scmp.eq.s32.totalorder %s2600_s14, 1  ;;  %p3164_p5 = scmp.eq.s32.totalorder %s2600_s14, 0 }
  0xb8   : > { %s2806_s21 = scalar_select %p38_p1, %s2481_s27, %s40_s4  }
  0xb9   : > { %p49_p2 = por %p48_p3, %p47_p8  ;;  %p2810_p7 = por %p3164_p5, %p53_p13 }
  0xba   : > { %p2814_p6 = por %p329_p0, %p47_p8  ;;  %p335_p9 = scmp.eq.s32.totalorder %s1749_s18, 1 }
  0xbb   : > { %p2056_p10 = scmp.lt.s32.totalorder %s2485_s28, 2  ;;  %s453_s30 = sand.u32 1, %s2481_s27  }
  0xbc   : > { %s3166_s29 = scalar_select %p2814_p6, 1, 0 }
  0xbd   : > { %p2820_p4 = por %p335_p9, %p53_p13  ;;  %s1759_s3 = sshll.u32 %s453_s30, 3 }
  0xbe   : > { %s1760_s22 = sshll.u32 %s2485_s28, 7  ;;  %s457_s16 = scalar_lea.vmem [#allocation2], %s1759_s3 }
  0xbf   : > { %s3167_s17 = scalar_select %p2820_p4, 1, 0 }
  0xc0   : > { %s2828_s11 = scalar_lea.hbm %s3136_s0, %s1760_s22  ;;  %s464_s12 = sshll.u32 %s457_s16, 4  ;;  %s2834_s12 = int_to_ptr.vmem [resolvable:$true] %s464_s12 }
  0xc1   : > { %p2830_p11 = pnand %p2056_p10, %p49_p2  ;;  %s454_s4 = scalar_lea.sflag [#allocation3], %s453_s30 }
  0xc2   : > { %s2373_s23 = scalar_lea.hbm %s2828_s11, 128  ;;  %s2378_s24 = scalar_lea.hbm %s3136_s0, 256 }
  0xc3   : > { %p2374_p12 = scmp.ne.s32.totalorder %s2828_s11, %s2373_s23  ;;  %p2375_p8 = pneg %p2830_p11 }
  0xc4   : > { %p2379_p13 = scmp.lt.u32.totalorder %s2828_s11, %s3136_s0  ;;  %p2380_p0 = scmp.lt.u32.totalorder %s2378_s24, %s2373_s23 }
  0xc5   : > { %p2376_p1 = pnand %p2375_p8, %p2374_p12  ;;  %p2382_p5 = scmp.lt.u32.totalorder %s2373_s23, %s2828_s11 }
  0xc6   : > { %p2381_p2 = por %p2380_p0, %p2379_p13 }
  0xc7   : > { %p2377_p3 = pneg %p2376_p1 }
  0xc8   : > { %p2383_p9 = por %p2382_p5, %p2381_p2 }
  0xca   : > { %p2384_p10 = pnand %p2383_p9, %p2377_p3 }
  0xcc   : > { %2387 = shalt.err (!%p2384_p10)
}
  0xcd   : > { %s2388_s30 = scalar_lea.vmem %s2834_s12, 128  ;;  %s2496_s22 = smov [#allocation2]  }
  0xce   : > { %p2389_p12 = scmp.ne.s32.totalorder %s2834_s12, %s2388_s30  ;;  %s2393_s3 = sshll.u32 %s2496_s22, 4  ;;  %s2394_s3 = int_to_ptr.vmem [resolvable:$false] %s2393_s3 }
  0xcf   : > { %s2395_s19 = scalar_lea.vmem %s2394_s3, 256  ;;  %p2396_p6 = scmp.lt.s32.totalorder %s2834_s12, %s2394_s3 }
  0xd0   : > { %p2391_p1 = pnand %p2389_p12, %p2375_p8  ;;  %p2397_p13 = scmp.lt.s32.totalorder %s2395_s19, %s2388_s30 }
  0xd2   : > { %p2392_p4 = pneg %p2391_p1  ;;  %p2398_p0 = por %p2397_p13, %p2396_p6 }
  0xd4   : > { %p2399_p2 = pnand %p2398_p0, %p2392_p4 }
  0xd6   : > { %2402 = shalt.err (!%p2399_p2)
}
  0xd7   : > { %2044 = dma.hbm_to_vmem [thread:$0]  (!%p2830_p11), %s2828_s11, 128, %s2834_s12, %s454_s4  }
  0xd8   : > { %p3169_p3 = scmp.ne.s32.totalorder %s3160_s15, 0 }
  0xd9   : > { %s2864_s23 = sand.u32 (!%p3169_p3), 1, %s2477_s26  }
  0xda   : > { %473 = sbr.rel (%p3169_p3) target bundleno = 3055 (0xbef), region = 72  ;;  %s1762_s24 = sshll.u32 (!%p3169_p3), %s2864_s23, 3 }
  0xdb   : > { %s476_s16 = scalar_lea.sflag (!%p3169_p3), [#allocation3], %s2864_s23  ;;  %s479_s30 = scalar_lea.vmem (!%p3169_p3), [#allocation2], %s1762_s24 }
  0xe1   : > { %2448 = dma.done.wait (%p2810_p7), %s476_s16, 128  }
  0xe2   : > { %2450 = vsyncadd (%p2810_p7), %s476_s16, 4294967168  ;;  %p3170_p6 = scmp.eq.s32.totalorder %s2600_s14, 0 }
  0xe4   : > { %2452 = dma.done.wait (%p3170_p6), [#allocation6], 640   ;;  %p3171_p4 = pmov %p3170_p6 }
  0xe6   : > { %2454 = vsyncadd (%p3171_p4), [#allocation6], 4294966656  ;;  %p3172_p11 = pmov %p3171_p4 }
  0xe7   : > { %p3173_p8 = pmov %p3171_p4 }
  0xe8   : > { %2456 = dma.done.wait (%p3172_p11), [#allocation9], 528  }
  0xe9   : > { %2458 = vsyncadd (%p3173_p8), [#allocation9], 4294966768  ;;  %p3174_p5 = pmov %p3171_p4 }
  0xea   : > { %p3175_p9 = pmov %p3171_p4 }
  0xeb   : > { %2460 = dma.done.wait (%p3174_p5), [#allocation12], 528  }
  0xec   : > { %2462 = vsyncadd (%p3175_p9), [#allocation12], 4294966768  ;;  %p3176_p7 = pmov %p3171_p4 }
  0xed   : > { %p3177_p10 = pmov %p3171_p4 }
  0xee   : > { %2464 = dma.done.wait (%p3176_p7), [#allocation15], 16  }
  0xef   : > { %2466 = vsyncadd (%p3177_p10), [#allocation15], 4294967280  ;;  %v2890_v0 = vld [vmem:[%s479_s30] sm:$0xff]  ;;  %vm553_vm0 = vcmask 523264   ;;  %v2497_v6 = vmov 0.0   ;;  %v2498_v11 = vmov 0   ;;  %v755_v49 = vlaneseq }
  0xf0   : > { %v552_v1 = vmul.f32 %v2890_v0, %v2890_v0  ;;  %v2117_v3 = vld [vmem:[%s3138_s2 + $0x4] ss:$12 sps:$4 sm:$0xff]   ;;  %v2119_v4 = vld [vmem:[%s3138_s2] ss:$12 sps:$4 sm:$0xff]   ;;  %v2120_v5 = vld [vmem:[%s3138_s2 + $0x8] ss:$12 sps:$4 sm:$0xff]   ;;  %1871 = vmatprep.subr.bf16.mxu1 %v2497_v6  ;;  %686 = vmatprep.mubr.bf16.mxu0 %v2498_v11 }
  0xf1   : > { %654 = vmatprep.subr.bf16.mxu0 %v2117_v3  ;;  %v2121_v7 = vld [vmem:[%s3138_s2 + $0x1c] ss:$12 sps:$4 sm:$0xff]   ;;  %1872 = vmatpush3.bf16.msra.mxu1 %v2120_v5  ;;  %v2123_v8 = vld [vmem:[%s3138_s2 + $0x18] ss:$12 sps:$4 sm:$0xff]   ;;  %v2124_v9 = vld [vmem:[%s3138_s2 + $0x20] ss:$12 sps:$4 sm:$0xff]  }
  0xf2   : > { %v554_v2 = vsel %vm553_vm0, %v552_v1, 0.0  ;;  %655 = vmatpush1.bf16.msra.mxu0 %v2119_v4  ;;  %1873 = vmatprep.subr.bf16.mxu1 %v2497_v6  ;;  %v2125_v10 = vld [vmem:[%s3138_s2 + $0x34] ss:$12 sps:$4 sm:$0xff]   ;;  %vm2499_vm1 = vmmov 0   ;;  %v2127_v12 = vld [vmem:[%s3138_s2 + $0x30] ss:$12 sps:$4 sm:$0xff]  }
  0xf3   : > { %555 = vadd.xlane.f32.xlu0 %v554_v2  ;;  %656 = vmatprep.subr.bf16.mxu0 %v2121_v7  ;;  %v2128_v13 = vld [vmem:[%s3138_s2 + $0x38] ss:$12 sps:$4 sm:$0xff]   ;;  %v2131_v15 = vld [vmem:[%s3138_s2 + $0x48] ss:$12 sps:$4 sm:$0xff]   ;;  %v2132_v16 = vld [vmem:[%s3138_s2 + $0x50] ss:$12 sps:$4 sm:$0xff]  }
  0xf4   : > { %1879 = vmatprep.mubr.msk.bf16.mxu1 %vm2499_vm1, %v2497_v6  ;;  %v2129_v14 = vld [vmem:[%s3138_s2 + $0x4c] ss:$12 sps:$4 sm:$0xff]   ;;  %v736_v17 = vld [vmem:[#allocation5] sm:$0xff]  ;;  %s2500_s11 = smov 64   ;;  %v1771_v22 = vld [vmem:[%s3137_s1] ss:$0 sm:$0xff] }
  0xf5   : > { %1874 = vmatpush3.bf16.msra.mxu1 %v2124_v9  ;;  %s3178_s3 = sld [smem:[#allocation23_spill]]  ;;  %vm764_vm2 = vcmask 130048   ;;  %vm827_vm3 = vcmask 1043456   ;;  %v756_v50 = vshrl.u32 %v755_v49, 7  ;;  %v758_v51 = vand.u32 127, %v755_v49  ;;  %s2502_s19 = smov 112  }
  0xf6   : > { %657 = vmatpush1.bf16.msra.mxu0 %v2123_v8  ;;  %1875 = vmatprep.subr.bf16.mxu1 %v2497_v6  ;;  %v2501_v52 = vmov -1e+09   ;;  %vm811_vm5 = vcmask 64512   ;;  %s2503_s16 = smov 96   ;;  %s2504_s30 = smov 80   ;;  %vm1217_vm6 = vcmask 261120  }
  0xf7   : > { %658 = vmatprep.subr.bf16.mxu0 %v2125_v10  ;;  %vm759_vm4 = vcmp.ge.s32.totalorder %v756_v50, %v758_v51  ;;  %s2505_s15 = smov 16   ;;  %s2506_s13 = smov 32   ;;  %vm1219_vm7 = vcmask 392192  }
  0xf8   : > { %v2962_v53 = vsel %vm759_vm4, 0.0, %v2501_v52  ;;  %s3179_s4 = sld [smem:[#allocation25_spill]]  ;;  %s549_s12 = scalar_lea.vmem [#allocation16], %s1762_s24 }
  0xf9   : > { %1876 = vmatpush3.bf16.msra.mxu1 %v2128_v13  ;;  %s1612_s18 = sshll.u32 %s549_s12, 4  ;;  %p3182_p1 = scmp.ne.s32.totalorder %s3166_s29, 0  ;;  %s3093_s18 = int_to_ptr.vmem [resolvable:$true] %s1612_s18 }
  0xfa   : > { %659 = vmatpush1.bf16.msra.mxu0 %v2127_v12  ;;  %1877 = vmatprep.subr.bf16.mxu1 %v2497_v6  ;;  %s2403_s24 = scalar_lea.vmem %s3093_s18, 128 }
  0xfb   : > { %660 = vmatprep.subr.bf16.mxu0 %v2129_v14  ;;  %v735_v37 = vld [vmem:[%s3178_s3] sm:$0xff]  ;;  %p2404_p12 = scmp.ne.s32.totalorder %s3093_s18, %s2403_s24 }
  0xfd   : > { %1878 = vmatpush3.bf16.msra.mxu1 %v2132_v16  ;;  %p2405_p13 = pnand %p2404_p12, %p3182_p1 }
  0xfe   : > { %661 = vmatpush1.bf16.msra.mxu0 %v2131_v15  ;;  %1901 = vmatprep.subr.bf16.mxu1 %v2497_v6 }
  0xff   : > { %1883 = vmatprep.subr.bf16.mxu0 %v2497_v6  ;;  %p2406_p0 = pneg %p2405_p13 }
 0x109   : > { %739 = vrot.lane.b32.xlu0 %v736_v17, %s2500_s11 }
 0x180   : > { %v556_v18 = vpop.xlane.xlu0 %555 }
 0x181   : > { %v558_v19 = vmul.f32 0.015625, %v556_v18 }
 0x183   : > { %v559_v20 = vadd.f32 1e-06, %v558_v19 }
 0x184   : > { %v740_v26 = vpop.permute.xlu0 %739 }
 0x185   : > { %2153 = vrsqrt.f32 %v559_v20 }
 0x18f   : > { %v2154_v21 = vpop.eup %2153 }
 0x190   : > { %v561_v23 = vmul.f32 %v2154_v21, %v2890_v0 }
 0x192   : > { %v569_v24 = vmul.f32 %v1771_v22, %v561_v23 }
 0x194   : > { %v570_v25 = vpack.c.bf16 %v569_v24, %v569_v24 }
 0x196   : > { %1784 = vmatmul.mubr.msk.bf16.vlgmr.msra.gmra.mrb[0].mxu0 %vm553_vm0, %v570_v25  ;;  %1880 = vmatmul.mubr.msk.bf16.vlgmr.msra.gmra.mrb[0].mxu1 %vm553_vm0, %v570_v25 }
 0x197   : > { %1885 = vmatprep.mubr.msk.bf16.mxu0 %vm2499_vm1, %v2497_v6  ;;  %1903 = vmatprep.mubr.msk.bf16.mxu1 %vm2499_vm1, %v2497_v6 }
 0x269   : > { %v688_v27 = vpop.f32.mrb[0].mxu0  ;;  %v729_v28 = vpop.f32.mrb[0].mxu1 }
 0x26a   : > { %v690_v29 = vpop.f32.mrb[1].mxu0  ;;  %v1881_v30 = vpop.f32.mrb[1].mxu1  ;;  %v742_v36 = vmul.f32 %v740_v26, %v688_v27  ;;  %v737_v43 = vmul.f32 %v735_v37, %v688_v27  ;;  %v2954_v46 = vpack.c.bf16 %v729_v28, %v729_v28 }
 0x26b   : > { %v692_v31 = vpop.f32.mrb[2].mxu0  ;;  %v732_v32 = vpop.f32.mrb[2].mxu1  ;;  %v749_v33 = vmul.f32 %v740_v26, %v690_v29  ;;  %v748_v38 = vmul.f32 %v735_v37, %v690_v29 }
 0x26c   : > { %v693_v34 = vpop.f32.mrb[3].mxu0  ;;  %v1882_v35 = vpop.f32.mrb[3].mxu1  ;;  %v829_v48 = vsel %vm827_vm3, %v2954_v46, 0 }
 0x26d   : > { %751 = vrot.lane.b32.xlu1 %v749_v33, %s2500_s11 }
 0x271   : > { %744 = vrot.lane.b32.xlu1 %v742_v36, %s2500_s11  ;;  %s2507_s11 = smov 48  }
 0x2df   : > { %v752_v39 = vpop.permute.xlu1 %751 }
 0x2e0   : > { %v754_v40 = vadd.f32 %v752_v39, %v748_v38 }
 0x2e2   : > { %v762_v41 = vpack.c.bf16 %v754_v40, %v754_v40 }
 0x2e3   : > { %v745_v42 = vpop.permute.xlu1 %744 }
 0x2e4   : > { %v769_v44 = vsel %vm764_vm2, %v762_v41, 0  ;;  %v747_v45 = vadd.f32 %v745_v42, %v737_v43 }
 0x2e5   : > { %1884 = vmatpush3.bf16.xpose.msra.mxu0 %v769_v44 }
 0x2e6   : > { %1889 = vmatprep.subr.bf16.mxu0 %v2497_v6  ;;  %v761_v47 = vpack.c.bf16 %v747_v45, %v747_v45 }
 0x2ec   : > { %1886 = vmatmul.mubr.msk.bf16.vlgmr.msra.gmra.mrb[4].mxu0 %vm764_vm2, %v761_v47 }
 0x2ed   : > { %1890 = vmatpush3.bf16.msra.mxu0 %v829_v48  ;;  %1891 = vmatprep.mubr.msk.bf16.mxu0 %vm2499_vm1, %v2497_v6 }
 0x2ee   : > { %1895 = vmatprep.subr.bf16.mxu0 %v2497_v6 }
 0x3bf   : > { %v805_v54 = vpop.f32.mrb[4].mxu0 }
 0x3c0   : > { %v806_v55 = vadd.f32 %v805_v54, %v2962_v53  ;;  %v1887_v56 = vpop.f32.mrb[5].mxu0 }
 0x3c1   : > { %v808_v57 = vpop.f32.mrb[6].mxu0 }
 0x3c2   : > { %v1888_v58 = vpop.f32.mrb[7].mxu0  ;;  %v812_v59 = vsel %vm811_vm5, %v806_v55, -inf }
 0x3c3   : > { %813 = vmax.xlane.f32.xlu1 %v812_v59 }
 0x3d4   : > { %875 = vrot.lane.b32.xlu1 %v762_v41, %s2502_s19 }
 0x3d8   : > { %986 = vrot.lane.b32.xlu1 %v762_v41, %s2503_s16 }
 0x3dc   : > { %984 = vrot.lane.b32.xlu1 %v761_v47, %s2503_s16 }
 0x3e0   : > { %1096 = vrot.lane.b32.xlu1 %v762_v41, %s2504_s30 }
 0x3e4   : > { %1094 = vrot.lane.b32.xlu1 %v761_v47, %s2504_s30 }
 0x450   : > { %v814_v60 = vpop.xlane.xlu1 %813 }
 0x451   : > { %v815_v61 = vsub.f32 %v806_v55, %v814_v60 }
 0x453   : > { %v816_v62 = vmul.f32 1.442695, %v815_v61 }
 0x454   : > { %v876_v4 = vpop.permute.xlu1 %875 }
 0x455   : > { %2155 = vpow2.f32 %v816_v62  ;;  %v881_v8 = vsel %vm764_vm2, %v876_v4, 0 }
 0x458   : > { %v987_v9 = vpop.permute.xlu1 %986 }
 0x459   : > { %v992_v12 = vsel %vm764_vm2, %v987_v9, 0  ;;  %v2133_v9 = vld [vmem:[#allocation7] sm:$0xff]  }
 0x45c   : > { %v985_v10 = vpop.permute.xlu1 %984 }
 0x45f   : > { %v2156_v63 = vpop.eup %2155 }
 0x460   : > { %v818_v1 = vsel %vm811_vm5, %v2156_v63, 0.0  ;;  %v1097_v13 = vpop.permute.xlu1 %1096 }
 0x461   : > { %819 = vadd.xlane.f32.xlu0 %v818_v1  ;;  %v1102_v14 = vsel %vm764_vm2, %v1097_v13, 0 }
 0x464   : > { %v1095_v15 = vpop.permute.xlu1 %1094 }
 0x477   : > { %872 = vrot.lane.b32.xlu0 %v761_v47, %s2502_s19 }
 0x4ee   : > { %v820_v2 = vpop.xlane.xlu0 %819 }
 0x4ef   : > { %2157 = vrcp.f32 %v820_v2 }
 0x4f2   : > { %v873_v11 = vpop.permute.xlu0 %872 }
 0x4f9   : > { %v2158_v3 = vpop.eup %2157 }
 0x4fa   : > { %v822_v5 = vmul.f32 %v2158_v3, %v2156_v63 }
 0x4fc   : > { %v823_v7 = vpack.c.bf16 %v822_v5, %v822_v5 }
 0x4fe   : > { %1892 = vmatmul.mubr.msk.bf16.vlgmr.msra.gmra.mrb[8].mxu0 %vm811_vm5, %v823_v7 }
 0x4ff   : > { %1896 = vmatpush3.bf16.xpose.msra.mxu0 %v881_v8  ;;  %1897 = vmatprep.mubr.msk.bf16.mxu0 %vm2499_vm1, %v2497_v6 }
 0x500   : > { %1907 = vmatprep.subr.bf16.mxu0 %v2497_v6 }
 0x506   : > { %1898 = vmatmul.mubr.msk.bf16.vlgmr.msra.gmra.mrb[12].mxu0 %vm764_vm2, %v873_v11 }
 0x507   : > { %1908 = vmatpush3.bf16.xpose.msra.mxu0 %v992_v12  ;;  %1909 = vmatprep.mubr.msk.bf16.mxu0 %vm2499_vm1, %v2497_v6 }
 0x508   : > { %1919 = vmatprep.subr.bf16.mxu0 %v2497_v6 }
 0x50e   : > { %1910 = vmatmul.mubr.msk.bf16.vlgmr.msra.gmra.mrb[16].mxu0 %vm764_vm2, %v985_v10  ;;  %v2134_v10 = vld [vmem:[#allocation7 + $0x8] sm:$0xff]  }
 0x50f   : > { %1920 = vmatpush3.bf16.xpose.msra.mxu0 %v1102_v14  ;;  %1921 = vmatprep.mubr.msk.bf16.mxu0 %vm2499_vm1, %v2497_v6  ;;  %v2135_v14 = vld [vmem:[#allocation7 + $0x10] sm:$0xff]  }
 0x510   : > { %1931 = vmatprep.subr.bf16.mxu0 %v2497_v6 }
 0x516   : > { %1922 = vmatmul.mubr.msk.bf16.vlgmr.msra.gmra.mrb[20].mxu0 %vm764_vm2, %v1095_v15 }
 0x517   : > { %1939 = vmatprep.mubr.msk.bf16.mxu0 %vm2499_vm1, %v2497_v6  ;;  %1932 = vmatpush3.bf16.msra.mxu0 %v2133_v9 }
 0x518   : > { %1933 = vmatprep.subr.bf16.mxu0 %v2497_v6 }
 0x51b   : > { %1934 = vmatpush3.bf16.msra.mxu0 %v2134_v10 }
 0x51c   : > { %1935 = vmatprep.subr.bf16.mxu0 %v2497_v6 }
 0x51f   : > { %1936 = vmatpush3.bf16.msra.mxu0 %v2135_v14 }
 0x520   : > { %1937 = vmatprep.subr.bf16.mxu0 %v2497_v6 }
 0x5d1   : > { %v2991_v16 = vpop.f32.mrb[8].mxu0 }
 0x5d2   : > { %v1893_v17 = vpop.f32.mrb[9].mxu0 }
 0x5d3   : > { %v868_v18 = vpop.f32.mrb[10].mxu0 }
 0x5d4   : > { %v1894_v19 = vpop.f32.mrb[11].mxu0 }
 0x5d9   : > { %v917_v20 = vpop.f32.mrb[12].mxu0 }
 0x5da   : > { %v918_v21 = vadd.f32 %v917_v20, %v2962_v53  ;;  %v1899_v22 = vpop.f32.mrb[13].mxu0 }
 0x5db   : > { %v920_v23 = vpop.f32.mrb[14].mxu0 }
 0x5dc   : > { %v1900_v24 = vpop.f32.mrb[15].mxu0  ;;  %v923_v25 = vsel %vm811_vm5, %v918_v21, -inf }
 0x5dd   : > { %924 = vmax.xlane.f32.xlu1 %v923_v25 }
 0x5e1   : > { %v1028_v26 = vpop.f32.mrb[16].mxu0 }
 0x5e2   : > { %v1029_v27 = vadd.f32 %v1028_v26, %v2962_v53  ;;  %v1911_v28 = vpop.f32.mrb[17].mxu0 }
 0x5e3   : > { %v1031_v29 = vpop.f32.mrb[18].mxu0 }
 0x5e4   : > { %v1912_v30 = vpop.f32.mrb[19].mxu0  ;;  %v1034_v31 = vsel %vm811_vm5, %v1029_v27, -inf }
 0x5e5   : > { %1035 = vmax.xlane.f32.xlu0 %v1034_v31 }
 0x5e9   : > { %v1138_v32 = vpop.f32.mrb[20].mxu0 }
 0x5ea   : > { %v1139_v33 = vadd.f32 %v1138_v32, %v2962_v53  ;;  %v1923_v34 = vpop.f32.mrb[21].mxu0 }
 0x5eb   : > { %v1141_v35 = vpop.f32.mrb[22].mxu0 }
 0x5ec   : > { %v1924_v36 = vpop.f32.mrb[23].mxu0  ;;  %v1144_v37 = vsel %vm811_vm5, %v1139_v33, -inf }
 0x5ed   : > { %1145 = vmax.xlane.f32.xlu0 %v1144_v37 }
 0x66a   : > { %v925_v38 = vpop.xlane.xlu1 %924 }
 0x66b   : > { %v926_v39 = vsub.f32 %v918_v21, %v925_v38  ;;  %v2136_v21 = vld [vmem:[#allocation7 + $0x18] sm:$0xff]  }
 0x66c   : > { %1938 = vmatpush3.bf16.msra.mxu0 %v2136_v21 }
 0x66d   : > { %v927_v40 = vmul.f32 1.442695, %v926_v39  ;;  %1955 = vmatprep.subr.bf16.mxu0 %v2497_v6  ;;  %v2137_v39 = vld [vmem:[#allocation10] sm:$0xff]  }
 0x66f   : > { %2159 = vpow2.f32 %v927_v40  ;;  %v2138_v40 = vld [vmem:[#allocation13] sm:$0xff]  }
 0x672   : > { %v1036_v41 = vpop.xlane.xlu0 %1035 }
 0x673   : > { %v1037_v42 = vsub.f32 %v1029_v27, %v1036_v41  ;;  %v2139_v41 = vld [vmem:[#allocation10 + $0x8] sm:$0xff]  }
 0x675   : > { %v1038_v43 = vmul.f32 1.442695, %v1037_v42  ;;  %v2141_v42 = vld [vmem:[#allocation10 + $0x10] sm:$0xff]  }
 0x677   : > { %2161 = vpow2.f32 %v1038_v43  ;;  %v2142_v43 = vld [vmem:[#allocation13 + $0x10] sm:$0xff]  }
 0x679   : > { %v2160_v44 = vpop.eup %2159 }
 0x67a   : > { %v929_v45 = vsel %vm811_vm5, %v2160_v44, 0.0  ;;  %v1146_v49 = vpop.xlane.xlu0 %1145 }
 0x67b   : > { %930 = vadd.xlane.f32.xlu1 %v929_v45  ;;  %v1147_v50 = vsub.f32 %v1139_v33, %v1146_v49  ;;  %v2144_v45 = vld [vmem:[#allocation13 + $0x18] sm:$0xff]  }
 0x67d   : > { %v1148_v51 = vmul.f32 1.442695, %v1147_v50 }
 0x67f   : > { %2163 = vpow2.f32 %v1148_v51  ;;  %v1799_v51 = vld [vmem:[#allocation8] ss:$0 sm:$0xff] }
 0x681   : > { %v2162_v47 = vpop.eup %2161 }
 0x682   : > { %v1040_v48 = vsel %vm811_vm5, %v2162_v47, 0.0 }
 0x683   : > { %1041 = vadd.xlane.f32.xlu0 %v1040_v48 }
 0x689   : > { %v2164_v52 = vpop.eup %2163 }
 0x68a   : > { %v1150_v53 = vsel %vm811_vm5, %v2164_v52, 0.0 }
 0x68c   : > { %1046 = vrot.lane.b32.xlu1 %v2954_v46, %s2503_s16 }
 0x699   : > { %936 = vrot.lane.b32.xlu0 %v2954_v46, %s2502_s19  ;;  %s3181_s19 = sld [smem:[#allocation27_spill]] }
 0x6b0   : > { %1151 = vadd.xlane.f32.xlu1 %v1150_v53 }
 0x6c1   : > { %1156 = vrot.lane.b32.xlu1 %v2954_v46, %s2504_s30  ;;  %s2508_s30 = smov [#allocation16]  }
 0x708   : > { %v931_v54 = vpop.xlane.xlu1 %930 }
 0x709   : > { %2165 = vrcp.f32 %v931_v54 }
 0x70c   : > { %v1047_v60 = vpop.permute.xlu1 %1046 }
 0x70d   : > { %v1052_v62 = vsel %vm827_vm3, %v1047_v60, 0  ;;  %v2150_v60 = vld [vmem:[%s3179_s4 + $0x28] sm:$0xff]  }
 0x710   : > { %v1042_v55 = vpop.xlane.xlu0 %1041 }
 0x711   : > { %2167 = vrcp.f32 %v1042_v55  ;;  %v2145_v55 = vld [vmem:[%s3179_s4] sm:$0xff]  }
 0x713   : > { %v2166_v56 = vpop.eup %2165 }
 0x714   : > { %v933_v57 = vmul.f32 %v2166_v56, %v2160_v44  ;;  %v937_v58 = vpop.permute.xlu0 %936  ;;  %v2143_v44 = vld [vmem:[#allocation10 + $0x18] sm:$0xff]   ;;  %v2146_v56 = vld [vmem:[%s3179_s4 + $0x8] sm:$0xff]  }
 0x715   : > { %v942_v59 = vsel %vm827_vm3, %v937_v58, 0  ;;  %v2148_v58 = vld [vmem:[%s3179_s4 + $0x18] sm:$0xff]  }
 0x716   : > { %1902 = vmatpush3.bf16.msra.mxu1 %v942_v59  ;;  %v934_v61 = vpack.c.bf16 %v933_v57, %v933_v57  ;;  %v2147_v57 = vld [vmem:[%s3179_s4 + $0x10] sm:$0xff]   ;;  %v2149_v59 = vld [vmem:[%s3179_s4 + $0x20] sm:$0xff]  }
 0x717   : > { %1913 = vmatprep.subr.bf16.mxu1 %v2497_v6 }
 0x719   : > { %1904 = vmatmul.mubr.msk.bf16.vlgmr.msra.gmra.mrb[4].mxu1 %vm811_vm5, %v934_v61  ;;  %v2151_v61 = vld [vmem:[%s3179_s4 + $0x30] sm:$0xff]  }
 0x71a   : > { %1914 = vmatpush3.bf16.msra.mxu1 %v1052_v62  ;;  %1915 = vmatprep.mubr.msk.bf16.mxu1 %vm2499_vm1, %v2497_v6  ;;  %v2152_v62 = vld [vmem:[%s3179_s4 + $0x38] sm:$0xff]  }
 0x71b   : > { %v2168_v46 = vpop.eup %2167  ;;  %1925 = vmatprep.subr.bf16.mxu1 %v2497_v6 }
 0x71c   : > { %v1044_v63 = vmul.f32 %v2168_v46, %v2162_v47  ;;  %v1800_v46 = vld [vmem:[#allocation11] ss:$0 sm:$0xff] }
 0x71e   : > { %v1045_v1 = vpack.c.bf16 %v1044_v63, %v1044_v63 }
 0x721   : > { %1916 = vmatmul.mubr.msk.bf16.vlgmr.msra.gmra.mrb[8].mxu1 %vm811_vm5, %v1045_v1 }
 0x722   : > { %1927 = vmatprep.mubr.msk.bf16.mxu1 %vm2499_vm1, %v2497_v6 }
 0x73d   : > { %v1152_v2 = vpop.xlane.xlu1 %1151 }
 0x73e   : > { %2169 = vrcp.f32 %v1152_v2 }
 0x741   : > { %v1157_v3 = vpop.permute.xlu1 %1156 }
 0x742   : > { %v1162_v4 = vsel %vm827_vm3, %v1157_v3, 0 }
 0x743   : > { %1926 = vmatpush3.bf16.msra.mxu1 %v1162_v4 }
 0x744   : > { %1943 = vmatprep.subr.bf16.mxu1 %v2497_v6 }
 0x748   : > { %v2170_v5 = vpop.eup %2169 }
 0x749   : > { %v1154_v7 = vmul.f32 %v2170_v5, %v2164_v52 }
 0x74b   : > { %v1155_v8 = vpack.c.bf16 %v1154_v7, %v1154_v7 }
 0x74d   : > { %1928 = vmatmul.mubr.msk.bf16.vlgmr.msra.gmra.mrb[12].mxu1 %vm811_vm5, %v1155_v8 }
 0x74e   : > { %1951 = vmatprep.mubr.msk.bf16.mxu1 %vm2499_vm1, %v2497_v6  ;;  %1944 = vmatpush3.bf16.msra.mxu1 %v2137_v39 }
 0x74f   : > { %1945 = vmatprep.subr.bf16.mxu1 %v2497_v6 }
 0x752   : > { %1946 = vmatpush3.bf16.msra.mxu1 %v2139_v41 }
 0x753   : > { %1947 = vmatprep.subr.bf16.mxu1 %v2497_v6 }
 0x756   : > { %1948 = vmatpush3.bf16.msra.mxu1 %v2141_v42 }
 0x757   : > { %1949 = vmatprep.subr.bf16.mxu1 %v2497_v6 }
 0x75a   : > { %1950 = vmatpush3.bf16.msra.mxu1 %v2143_v44 }
 0x75b   : > { %1967 = vmatprep.subr.bf16.mxu1 %v2497_v6 }
 0x7ec   : > { %v978_v11 = vpop.f32.mrb[4].mxu1 }
 0x7ed   : > { %1205 = vrot.lane.b32.xlu0 %v978_v11, %s2505_s15  ;;  %v1905_v12 = vpop.f32.mrb[5].mxu1  ;;  %s2407_s15 = sshll.u32 %s2508_s30, 4  ;;  %s2408_s15 = int_to_ptr.vmem [resolvable:$false] %s2407_s15 }
 0x7ee   : > { %v981_v13 = vpop.f32.mrb[6].mxu1  ;;  %v1806_v12 = vld [vmem:[#allocation14] ss:$0 sm:$0xff]  ;;  %p2410_p2 = scmp.lt.s32.totalorder %s3093_s18, %s2408_s15 }
 0x7ef   : > { %v1906_v15 = vpop.f32.mrb[7].mxu1 }
 0x7f4   : > { %v1088_v17 = vpop.f32.mrb[8].mxu1 }
 0x7f5   : > { %1209 = vrot.lane.b32.xlu1 %v1088_v17, %s2506_s13  ;;  %v1917_v18 = vpop.f32.mrb[9].mxu1  ;;  %s3180_s13 = sld [smem:[#allocation26_spill]] }
 0x7f6   : > { %v1091_v19 = vpop.f32.mrb[10].mxu1 }
 0x7f7   : > { %v1918_v20 = vpop.f32.mrb[11].mxu1 }
 0x7fb   : > { %v1813_v19 = vld [vmem:[%s3180_s13] ss:$0 sm:$0xff]  ;;  %s2409_s13 = scalar_lea.vmem %s2408_s15, 256 }
 0x7fc   : > { %p2411_p3 = scmp.lt.s32.totalorder %s2409_s13, %s2403_s24 }
 0x7fe   : > { %p2412_p6 = por %p2411_p3, %p2410_p2 }
 0x800   : > { %p2413_p4 = pnand %p2412_p6, %p2406_p0 }
 0x820   : > { %v1198_v22 = vpop.f32.mrb[12].mxu1 }
 0x821   : > { %1213 = vrot.lane.b32.xlu0 %v1198_v22, %s2507_s11  ;;  %v1929_v23 = vpop.f32.mrb[13].mxu1  ;;  %s1823_s11 = sshll.u32 %s2600_s14, 7  ;;  %s1599_s14 = scalar_lea.sflag [#allocation4], %s2864_s23 }
 0x822   : > { %v1201_v24 = vpop.f32.mrb[14].mxu1  ;;  %s3091_s16 = scalar_lea.hbm %s3181_s19, %s1823_s11 }
 0x823   : > { %v1930_v25 = vpop.f32.mrb[15].mxu1 }
 0x85f   : > { %v1206_v26 = vpop.permute.xlu0 %1205 }
 0x860   : > { %v1216_v28 = vsel %vm764_vm2, %v2991_v16, %v1206_v26 }
 0x867   : > { %v1210_v27 = vpop.permute.xlu1 %1209 }
 0x868   : > { %v1218_v29 = vsel %vm1217_vm6, %v1216_v28, %v1210_v27 }
 0x893   : > { %v1214_v30 = vpop.permute.xlu0 %1213 }
 0x894   : > { %v1220_v31 = vsel %vm1219_vm7, %v1218_v29, %v1214_v30 }
 0x895   : > { %v1221_v32 = vpack.c.bf16 %v1220_v31, %v1220_v31 }
 0x897   : > { %1940 = vmatmul.mubr.msk.bf16.vlgmr.msra.gmra.mrb[24].mxu0 %vm553_vm0, %v1221_v32 }
 0x898   : > { %1963 = vmatprep.mubr.msk.bf16.mxu0 %vm2499_vm1, %v2497_v6  ;;  %1956 = vmatpush3.bf16.msra.mxu0 %v2138_v40 }
 0x899   : > { %1957 = vmatprep.subr.bf16.mxu0 %v2497_v6 }
 0x96a   : > { %v1291_v33 = vpop.f32.mrb[24].mxu0 }
 0x96b   : > { %v3033_v34 = vadd.f32 %v1291_v33, %v2890_v0  ;;  %v1941_v35 = vpop.f32.mrb[25].mxu0  ;;  %v2140_v0 = vld [vmem:[#allocation13 + $0x8] sm:$0xff]  }
 0x96c   : > { %v1294_v36 = vpop.f32.mrb[26].mxu0  ;;  %1958 = vmatpush3.bf16.msra.mxu0 %v2140_v0 }
 0x96d   : > { %v1942_v37 = vpop.f32.mrb[27].mxu0  ;;  %v1298_v38 = vmul.f32 %v3033_v34, %v3033_v34  ;;  %1959 = vmatprep.subr.bf16.mxu0 %v2497_v6 }
 0x96f   : > { %v1299_v16 = vsel %vm553_vm0, %v1298_v38, 0.0 }
 0x970   : > { %1300 = vadd.xlane.f32.xlu1 %v1299_v16  ;;  %1960 = vmatpush3.bf16.msra.mxu0 %v2142_v43 }
 0x971   : > { %1961 = vmatprep.subr.bf16.mxu0 %v2497_v6 }
 0x974   : > { %1962 = vmatpush3.bf16.msra.mxu0 %v2144_v45 }
 0x9fd   : > { %v1301_v47 = vpop.xlane.xlu1 %1300 }
 0x9fe   : > { %v1302_v48 = vmul.f32 0.015625, %v1301_v47 }
 0xa00   : > { %v1303_v49 = vadd.f32 1e-06, %v1302_v48 }
 0xa02   : > { %2171 = vrsqrt.f32 %v1303_v49 }
 0xa0c   : > { %v2172_v50 = vpop.eup %2171 }
 0xa0d   : > { %v1305_v52 = vmul.f32 %v2172_v50, %v3033_v34 }
 0xa0f   : > { %v1313_v53 = vmul.f32 %v1799_v51, %v1305_v52 }
 0xa11   : > { %v1314_v54 = vpack.c.bf16 %v1313_v53, %v1313_v53 }
 0xa13   : > { %1952 = vmatmul.mubr.msk.bf16.vlgmr.msra.gmra.mrb[16].mxu1 %vm553_vm0, %v1314_v54  ;;  %1964 = vmatmul.mubr.msk.bf16.vlgmr.msra.gmra.mrb[28].mxu0 %vm553_vm0, %v1314_v54 }
 0xa14   : > { %1983 = vmatprep.mubr.msk.bf16.mxu1 %vm2499_vm1, %v2497_v6  ;;  %1968 = vmatpush3.bf16.msra.mxu1 %v2145_v55 }
 0xa15   : > { %1969 = vmatprep.subr.bf16.mxu1 %v2497_v6 }
 0xa18   : > { %1970 = vmatpush3.bf16.msra.mxu1 %v2146_v56 }
 0xa19   : > { %1971 = vmatprep.subr.bf16.mxu1 %v2497_v6 }
 0xa1c   : > { %1972 = vmatpush3.bf16.msra.mxu1 %v2147_v57 }
 0xa1d   : > { %1973 = vmatprep.subr.bf16.mxu1 %v2497_v6 }
 0xa20   : > { %1974 = vmatpush3.bf16.msra.mxu1 %v2148_v58 }
 0xa21   : > { %1975 = vmatprep.subr.bf16.mxu1 %v2497_v6 }
 0xa24   : > { %1976 = vmatpush3.bf16.msra.mxu1 %v2149_v59 }
 0xa25   : > { %1977 = vmatprep.subr.bf16.mxu1 %v2497_v6 }
 0xa28   : > { %1978 = vmatpush3.bf16.msra.mxu1 %v2150_v60 }
 0xa29   : > { %1979 = vmatprep.subr.bf16.mxu1 %v2497_v6 }
 0xa2c   : > { %1980 = vmatpush3.bf16.msra.mxu1 %v2151_v61 }
 0xa2d   : > { %1981 = vmatprep.subr.bf16.mxu1 %v2497_v6 }
 0xa30   : > { %1982 = vmatpush3.bf16.msra.mxu1 %v2152_v62 }
 0xae6   : > { %v1391_v63 = vpop.f32.mrb[16].mxu1  ;;  %v1470_v1 = vpop.f32.mrb[28].mxu0 }
 0xae7   : > { %v1392_v2 = vadd.f32 %v1800_v46, %v1391_v63  ;;  %v1953_v3 = vpop.f32.mrb[17].mxu1  ;;  %v1965_v4 = vpop.f32.mrb[29].mxu0  ;;  %v1471_v15 = vadd.f32 %v1806_v12, %v1470_v1 }
 0xae8   : > { %v1394_v5 = vpop.f32.mrb[18].mxu1  ;;  %v1473_v7 = vpop.f32.mrb[30].mxu0 }
 0xae9   : > { %v1812_v8 = vmul.f32 -1.442695, %v1392_v2  ;;  %v1954_v9 = vpop.f32.mrb[19].mxu1  ;;  %v1966_v10 = vpop.f32.mrb[31].mxu0 }
 0xaeb   : > { %2173 = vpow2.f32 %v1812_v8 }
 0xaf5   : > { %v2174_v6 = vpop.eup %2173 }
 0xaf6   : > { %v1479_v11 = vadd.f32 1.0, %v2174_v6 }
 0xaf8   : > { %2175 = vrcp.f32 %v1479_v11 }
 0xb02   : > { %v2176_v13 = vpop.eup %2175 }
 0xb03   : > { %v1482_v14 = vmul.f32 %v2176_v13, %v1392_v2 }
 0xb05   : > { %v1483_v17 = vmul.f32 %v1482_v14, %v1471_v15 }
 0xb07   : > { %v1484_v18 = vpack.c.bf16 %v1483_v17, %v1483_v17 }
 0xb09   : > { %1984 = vmatmul.mubr.bf16.vlgmr.msra.gmra.mrb[20].mxu1 %v1484_v18 }
 0xbdc   : > { %v1590_v20 = vpop.f32.mrb[20].mxu1 }
 0xbdd   : > { %v1591_v21 = vadd.f32 %v1813_v19, %v1590_v20  ;;  %v1985_v22 = vpop.f32.mrb[21].mxu1 }
 0xbde   : > { %v1593_v23 = vpop.f32.mrb[22].mxu1 }
 0xbdf   : > { %v1596_v24 = vadd.f32 %v1591_v21, %v3033_v34  ;;  %v1986_v25 = vpop.f32.mrb[23].mxu1 }
 0xbe1   : > { %1597 = vst.msk [vmem:[%s549_s12] sm:$0xff] %vm553_vm0, %v1596_v24 }
 0xbe2   : > { %2416 = shalt.err (!%p2413_p4)
}
 0xbe3   : > { %s2417_s23 = scalar_lea.hbm %s3091_s16, 128  ;;  %s2421_s22 = scalar_lea.hbm %s3181_s19, 256 }
 0xbe4   : > { %p2418_p11 = scmp.ne.s32.totalorder %s3091_s16, %s2417_s23  ;;  %p2422_p9 = scmp.lt.u32.totalorder %s3091_s16, %s3181_s19 }
 0xbe5   : > { %p2423_p7 = scmp.lt.u32.totalorder %s2421_s22, %s2417_s23  ;;  %p2425_p12 = scmp.lt.u32.totalorder %s2417_s23, %s3091_s16 }
 0xbe6   : > { %p2419_p8 = pnand %p2418_p11, %p3182_p1 }
 0xbe7   : > { %p2424_p10 = por %p2423_p7, %p2422_p9 }
 0xbe8   : > { %p2420_p5 = pneg %p2419_p8 }
 0xbe9   : > { %p2426_p13 = por %p2425_p12, %p2424_p10 }
 0xbeb   : > { %p2427_p0 = pnand %p2426_p13, %p2420_p5 }
 0xbed   : > { %2430 = shalt.err (!%p2427_p0)
}
 0xbee   : > { %2017 = dma.vmem_to_hbm [thread:$0]  (%p3182_p1), %s3093_s18, 128, %s3091_s16, %s1599_s14  }
 0xbef PF: > { %s1624_s24 = sand.u32 1, %s2473_s25   ;;  %p3183_p2 = scmp.ne.s32.totalorder %s3167_s17, 0 }
 0xbf0   : > { %p3184_p3 = scmp.ge.s32.totalorder %s2485_s28, 2  ;;  %s1625_s15 = scalar_lea.sflag [#allocation4], %s1624_s24 }
 0xbf2   : > { %p2046_p6 = pnand %p3184_p3, %p3183_p2 }
 0xbf4   : > { %2468 = dma.done.wait (!%p2046_p6), %s1625_s15, 128  }
 0xbf5   : > { %2470 = vsyncadd (!%p2046_p6), %s1625_s15, 4294967168  ;;  %p30_p4 = scmp.ge.s32.totalorder %s2794_s20, 4   ;;  %s3185_s25 = smov %s2477_s26 }
 0xbf6   : > { %s3186_s26 = smov %s2481_s27  ;;  %s3187_s27 = smov %s2806_s21 }
 0xbf7   : > { %s3188_s28 = smov %s2794_s20  ;;  %32 = sbr.rel (!%p30_p4) target bundleno = 15 (0xf), region = 145 }
 0xbfe   :  { %1630 = vsyncpa [#allocation3], 1 }
 0xbff   :  { %1632 = vsyncpa [#allocation3 + $0x1], 1 }
 0xc00   :  { %1633 = vsyncpa [#allocation6], 1 }
 0xc01   :  { %1634 = vsyncpa [#allocation9], 1 }
 0xc02   :  { %1635 = vsyncpa [#allocation12], 1 }
 0xc03   :  { %1636 = vsyncpa [#allocation15], 1 }
 0xc04   :  { %1637 = vsyncpa [#allocation4], 1 }
 0xc05   :  { %1639 = vsyncpa [#allocation4 + $0x1], 1 }

</bundles_post_ra>
